<compile_context>
chip_gen: v5e
topology: v5e:2x2
jax: 0.10.0
libtpu: 0.0.40
codegen_flags: <defaults>
</compile_context>

<pallas_src>
import functools

import jax
import jax.numpy as jnp
from jax.experimental import pallas as pl
from jax.experimental.pallas import tpu as pltpu


def _default_blk_co():
    """128-wide blocks on 2-TC v7x (one per core), 256 on 1-TC v5e/v6e."""
    try:
        kind = jax.devices()[0].device_kind.lower()
    except Exception:  # pragma: no cover - defensive; default is always valid
        kind = ""
    return 128 if "v7" in kind else 256


def pack_conv1x1_params(weight, bias, *, param_dtype=None, blk_co=None):
    """One-time parameter packing (do this at init, not per call).

    weight: [C_out, C_in, 1, 1]  (native Conv2d layout)
    bias:   [C_out]
    Returns (w_t_pad [C_in, C_out_pad] in param_dtype, b_pad [1, C_out_pad] f32).
    """
    blk_co = blk_co or _default_blk_co()
    c_out, c_in = weight.shape[0], weight.shape[1]
    c_out_pad = pl.cdiv(c_out, blk_co) * blk_co

    if param_dtype is None:
        param_dtype = weight.dtype

    w2d = weight.reshape(c_out, c_in).T.astype(param_dtype)   # [C_in, C_out]
    w_t_pad = jnp.zeros((c_in, c_out_pad), param_dtype).at[:, :c_out].set(w2d)
    b_pad = jnp.zeros((1, c_out_pad), jnp.float32).at[0, :c_out].set(
        bias.astype(jnp.float32))
    return w_t_pad, b_pad


def _conv1x1_relu_kernel(x_ref, w_ref, b_ref, o_ref):
    # x_ref: [N, C_in]          activations
    # w_ref: [C_in, BLK_CO]     pre-transposed, pre-padded weight column block
    # b_ref: [1, BLK_CO]        pre-padded bias block (f32)
    # o_ref: [N, BLK_CO]
    acc = jnp.dot(x_ref[...], w_ref[...], preferred_element_type=jnp.float32)
    acc = acc + b_ref[...]
    o_ref[...] = jnp.maximum(acc, 0.0).astype(o_ref.dtype)


@functools.partial(jax.jit, static_argnames=("c_out", "blk_co"))
def conv1x1_relu(x_nchw, w_t_pad, b_pad, *, c_out, blk_co=None):
    """Conv2d(C_in, C_out, kernel=1, stride=1) + ReLU for 1x1 spatial inputs.

    x_nchw:  [N, C_in, 1, 1]
    w_t_pad: [C_in, C_out_pad]  from pack_conv1x1_params
    b_pad:   [1, C_out_pad]     from pack_conv1x1_params
    Returns f32 [N, C_out, 1, 1].
    """
    n, c_in, h, w = x_nchw.shape
    assert h == 1 and w == 1, "this kernel handles 1x1 spatial maps"
    c_out_pad = w_t_pad.shape[1]

    blk_co = blk_co or _default_blk_co()
    if c_out_pad % blk_co != 0:          # defensive fallback: single block
        blk_co = c_out_pad
    n_blocks = c_out_pad // blk_co

    x2d = x_nchw.reshape(n, c_in)

    bytes_accessed = (
        x2d.size * x2d.dtype.itemsize
        + w_t_pad.size * w_t_pad.dtype.itemsize
        + b_pad.size * b_pad.dtype.itemsize
        + n * c_out_pad * 4
    )

    out2d = pl.pallas_call(
        _conv1x1_relu_kernel,
        out_shape=jax.ShapeDtypeStruct((n, c_out_pad), jnp.float32),
        grid_spec=pl.GridSpec(
            grid=(n_blocks,),
            in_specs=[
                pl.BlockSpec((n, c_in), lambda i: (0, 0)),       # x (tiny)
                pl.BlockSpec((c_in, blk_co), lambda i: (0, i)),  # weight cols
                pl.BlockSpec((1, blk_co), lambda i: (0, i)),     # bias block
            ],
            out_specs=pl.BlockSpec((n, blk_co), lambda i: (0, i)),
        ),
        compiler_params=pltpu.CompilerParams(
            # Independent output blocks -> shard across TensorCores on v7x;
            # harmless single step on 1-TC chips.
            dimension_semantics=("parallel",),
        ),
        cost_estimate=pl.CostEstimate(
            flops=2 * n * c_in * c_out_pad,
            transcendentals=0,
            bytes_accessed=bytes_accessed,
        ),
    )(x2d, w_t_pad, b_pad)

    # Drop the lane padding (c_out_pad -> c_out) and restore NCHW.
    return out2d[:, :c_out].reshape(n, c_out, 1, 1)


if __name__ == "__main__":
    N, C_IN, C_OUT = 1, 2016, 224   # shapes implied by the module's forward

    key = jax.random.PRNGKey(0)
    k_x, k_w, k_b = jax.random.split(key, 3)

    x = jax.random.normal(k_x, (N, C_IN, 1, 1), dtype=jnp.float32)
    fan_in = C_IN  # kernel size 1x1
    bound = 1.0 / (fan_in ** 0.5)
    weight = jax.random.uniform(
        k_w, (C_OUT, C_IN, 1, 1), minval=-bound, maxval=bound, dtype=jnp.float32
    )
    bias = jax.random.uniform(
        k_b, (C_OUT,), minval=-bound, maxval=bound, dtype=jnp.float32
    )

    # ---- f32 path (exact module semantics) ----
    w_pack32, b_pack = pack_conv1x1_params(weight, bias, param_dtype=jnp.float32)
    out = jax.block_until_ready(conv1x1_relu(x, w_pack32, b_pack, c_out=C_OUT))
    ref = jnp.maximum(
        jnp.einsum("nc,oc->no", x.reshape(N, C_IN), weight.reshape(C_OUT, C_IN))
        + bias[None, :],
        0.0,
    ).reshape(N, C_OUT, 1, 1)
    assert out.shape == (N, C_OUT, 1, 1)
    assert jnp.allclose(out, ref, atol=1e-3, rtol=1e-3)

    # ---- bf16 production path: bf16 weights/x (cast once), f32 accumulate ----
    w_pack16, b_pack16 = pack_conv1x1_params(weight, bias, param_dtype=jnp.bfloat16)
    x_bf = x.astype(jnp.bfloat16)
    out_bf = jax.block_until_ready(conv1x1_relu(x_bf, w_pack16, b_pack16, c_out=C_OUT))
    ref_bf = jnp.maximum(
        jnp.einsum(
            "nc,oc->no",
            x_bf.reshape(N, C_IN),
            weight.astype(jnp.bfloat16).reshape(C_OUT, C_IN),
            preferred_element_type=jnp.float32,
        )
        + bias[None, :],
        0.0,
    ).reshape(N, C_OUT, 1, 1)
    assert out_bf.shape == (N, C_OUT, 1, 1)
    assert jnp.allclose(out_bf, ref_bf, atol=2e-2, rtol=2e-2)

    print("KERNEL_OK")
</pallas_src>

<mosaic_0001>
module attributes {stable_mosaic.version = 11 : i64} {
  func.func @_conv1x1_relu_kernel(%arg0: i32, %arg1: memref<1x2016xf32, #tpu.memory_space<vmem>>, %arg2: memref<2016x256xf32, #tpu.memory_space<vmem>>, %arg3: memref<1x256xf32, #tpu.memory_space<vmem>>, %arg4: memref<1x256xf32, #tpu.memory_space<vmem>>) attributes {dimension_semantics = [#tpu.dimension_semantics<parallel>], iteration_bounds = array<i64: 1>, scalar_prefetch = 0 : i64, scratch_operands = 0 : i64, tpu.core_type = #tpu.core_type<tc>, window_params = [{pipeline_mode = #tpu.pipeline_mode<synchronous>, transform_indices = @transform_0, window_bounds = array<i64: 1, 2016>}, {transform_indices = @transform_1, window_bounds = array<i64: 2016, 256>}, {transform_indices = @transform_2, window_bounds = array<i64: 1, 256>}, {transform_indices = @transform_3, window_bounds = array<i64: 1, 256>}]} {
    %c0 = arith.constant 0 : index
    %c0_0 = arith.constant 0 : index
    %0 = vector.load %arg1[%c0, %c0_0] : memref<1x2016xf32, #tpu.memory_space<vmem>>, vector<1x2016xf32>
    %c0_1 = arith.constant 0 : index
    %c0_2 = arith.constant 0 : index
    %1 = vector.load %arg2[%c0_1, %c0_2] : memref<2016x256xf32, #tpu.memory_space<vmem>>, vector<2016x256xf32>
    %cst = arith.constant dense<0.000000e+00> : vector<1x256xf32>
    %2 = tpu.matmul %0, %1, %cst {dimension_numbers = #tpu.dot_dimension_numbers<[1], [0], [0], [1], [0, 0, 1, 1], [], []>} : vector<1x2016xf32>, vector<2016x256xf32>, vector<1x256xf32> -> vector<1x256xf32>
    %c0_3 = arith.constant 0 : index
    %c0_4 = arith.constant 0 : index
    %3 = vector.load %arg3[%c0_3, %c0_4] : memref<1x256xf32, #tpu.memory_space<vmem>>, vector<1x256xf32>
    %4 = arith.addf %2, %3 : vector<1x256xf32>
    %cst_5 = arith.constant 0.000000e+00 : f32
    %5 = vector.broadcast %cst_5 : f32 to vector<1x256xf32>
    %6 = arith.maximumf %4, %5 : vector<1x256xf32>
    %c0_6 = arith.constant 0 : index
    %c0_7 = arith.constant 0 : index
    %7 = vector.load %arg4[%c0_6, %c0_7] : memref<1x256xf32, #tpu.memory_space<vmem>>, vector<1x256xf32>
    tpu.vector_store %arg4[%c0_6, %c0_7], %6 {strides = array<i32>} : memref<1x256xf32, #tpu.memory_space<vmem>>, vector<1x256xf32>,
    return
  }
  func.func @transform_0(%arg0: i32) -> (i32, i32) {
    %c0_i32 = arith.constant 0 : i32
    %c0_i32_0 = arith.constant 0 : i32
    %c0_i32_1 = arith.constant 0 : i32
    return %c0_i32, %c0_i32_0 : i32, i32
  }
  func.func @transform_1(%arg0: i32) -> (i32, i32) {
    %c0_i32 = arith.constant 0 : i32
    %c0_i32_0 = arith.constant 0 : i32
    return %c0_i32, %arg0 : i32, i32
  }
  func.func @transform_2(%arg0: i32) -> (i32, i32) {
    %c0_i32 = arith.constant 0 : i32
    %c0_i32_0 = arith.constant 0 : i32
    return %c0_i32, %arg0 : i32, i32
  }
  func.func @transform_3(%arg0: i32) -> (i32, i32) {
    %c0_i32 = arith.constant 0 : i32
    %c0_i32_0 = arith.constant 0 : i32
    return %c0_i32, %arg0 : i32, i32
  }
}

</mosaic_0001>

<bundles_post_ra>
// kernel: conv1x1_relu.1
= control target key start
LH: loop header
LB: loop body
LE: loop exit
PB: predicated region body
PF: predicated region fallthrough
CT: control target
= control target key end

     0   :  { %8 = vsyncpa [#allocation3], 0  ;;  %s1470_s0 = inlined_call_operand.hbm [shape: f32[1,2016], index: 0, kind: input, shape index: {}]   ;;  %s1471_s1 = inlined_call_operand.hbm [shape: f32[2016,256], index: 1, kind: input, shape index: {}]   ;;  %s1472_s2 = inlined_call_operand.hbm [shape: f32[1,256], index: 2, kind: input, shape index: {}]   ;;  %s1473_s3 = inlined_call_operand.vmem [shape: f32[1,256], index: 3, kind: output, shape index: {}]  }
   0x1   :  { %9 = vsyncpa [#allocation5], 0  ;;  %s25_s14 = sshll.u32 %s1471_s1, 4  ;;  %s1347_s15 = smov [#allocation4]   ;;  %s26_s14 = int_to_ptr.hbm [resolvable:$true] %s25_s14 }
   0x2   :  { %s27_s16 = sshll.u32 %s1347_s15, 4  ;;  %s15_s19 = sshll.u32 %s1470_s0, 4  ;;  %s28_s16 = int_to_ptr.vmem [resolvable:$true] %s27_s16  ;;  %s16_s19 = int_to_ptr.hbm [resolvable:$true] %s15_s19 }
   0x3   :  { %s1348_s20 = smov 256   ;;  %s1349_s21 = smov 16  }
   0x4   :  { %33 = dma.hbm_to_vmem [thread:$0]  %s26_s14, 64512, %s28_s16, [#allocation5], %s1348_s20, %s1348_s20, %s1349_s21  }
   0x5   :  { %s1350_s22 = smov [#allocation2]   ;;  %s39_s26 = sshll.u32 %s1472_s2, 4  ;;  %s40_s26 = int_to_ptr.hbm [resolvable:$true] %s39_s26 }
   0x6   :  { %s17_s23 = sshll.u32 %s1350_s22, 4  ;;  %s1351_s1 = smov [#allocation6]   ;;  %s18_s23 = int_to_ptr.vmem [resolvable:$true] %s17_s23 }
   0x7   :  { %20 = dma.hbm_to_vmem [thread:$0]  %s16_s19, 256, %s18_s23, [#allocation3]  }
   0x8   :  { %s41_s27 = sshll.u32 %s1351_s1, 4  ;;  %s42_s27 = int_to_ptr.vmem [resolvable:$true] %s41_s27 }
   0x9   :  { %44 = dma.hbm_to_vmem [thread:$0]  %s40_s26, 32, %s42_s27, [#allocation5]  }
   0xa   :  { %1343 = dma.done.wait [#allocation3], 256  }
   0xb   :  { %1344 = vsyncadd [#allocation3], 4294967040 }
   0xc   :  { %1345 = dma.done.wait [#allocation5], 64544  }
   0xd   :  { %1346 = vsyncadd [#allocation5], 4294902752  ;;  %v89_v0 = vld [vmem:[#allocation4 + $0xf0] sm:$0xff]  ;;  %v87_v3 = vld [vmem:[#allocation4 + $0xe0] sm:$0xff]  ;;  %vm602_vm0 = vcmask 785408   ;;  %vm1250_vm1 = vcmask 1040384  }
   0xe   :  { %v153_v1 = vld [vmem:[#allocation4 + $0x2f0] sm:$0xff]  ;;  %605 = vmatpush.msra.mxu0 %v89_v0  ;;  %v151_v5 = vld [vmem:[#allocation4 + $0x2e0] sm:$0xff] }
   0xf   :  { %v185_v2 = vld [vmem:[#allocation4 + $0x3f0] sm:$0xff]  ;;  %645 = vmatpush.msra.mxu2 %v153_v1  ;;  %v183_v6 = vld [vmem:[#allocation4 + $0x3e0] sm:$0xff] }
  0x10   :  { %v121_v4 = vld [vmem:[#allocation4 + $0x1f0] sm:$0xff]  ;;  %665 = vmatpush.msra.mxu3 %v185_v2  ;;  %v119_v8 = vld [vmem:[#allocation4 + $0x1e0] sm:$0xff]  ;;  %606 = vmatpush.msra.mxu0 %v87_v3 }
  0x11   :  { %625 = vmatpush.msra.mxu1 %v121_v4  ;;  %v85_v7 = vld [vmem:[#allocation4 + $0xd0] sm:$0xff]  ;;  %646 = vmatpush.msra.mxu2 %v151_v5  ;;  %v83_v11 = vld [vmem:[#allocation4 + $0xc0] sm:$0xff] }
  0x12   :  { %v149_v9 = vld [vmem:[#allocation4 + $0x2d0] sm:$0xff]  ;;  %666 = vmatpush.msra.mxu3 %v183_v6  ;;  %v147_v13 = vld [vmem:[#allocation4 + $0x2c0] sm:$0xff]  ;;  %607 = vmatpush.msra.mxu0 %v85_v7 }
  0x13   :  { %v181_v10 = vld [vmem:[#allocation4 + $0x3d0] sm:$0xff]  ;;  %626 = vmatpush.msra.mxu1 %v119_v8  ;;  %647 = vmatpush.msra.mxu2 %v149_v9  ;;  %v179_v14 = vld [vmem:[#allocation4 + $0x3c0] sm:$0xff] }
  0x14   :  { %v117_v12 = vld [vmem:[#allocation4 + $0x1d0] sm:$0xff]  ;;  %v115_v15 = vld [vmem:[#allocation4 + $0x1c0] sm:$0xff]  ;;  %667 = vmatpush.msra.mxu3 %v181_v10  ;;  %608 = vmatpush.msra.mxu0 %v83_v11 }
  0x15   :  { %627 = vmatpush.msra.mxu1 %v117_v12  ;;  %v81_v16 = vld [vmem:[#allocation4 + $0xb0] sm:$0xff]  ;;  %648 = vmatpush.msra.mxu2 %v147_v13  ;;  %v79_v20 = vld [vmem:[#allocation4 + $0xa0] sm:$0xff] }
  0x16   :  { %v145_v17 = vld [vmem:[#allocation4 + $0x2b0] sm:$0xff]  ;;  %668 = vmatpush.msra.mxu3 %v179_v14  ;;  %v143_v21 = vld [vmem:[#allocation4 + $0x2a0] sm:$0xff]  ;;  %609 = vmatpush.msra.mxu0 %v81_v16 }
  0x17   :  { %v177_v18 = vld [vmem:[#allocation4 + $0x3b0] sm:$0xff]  ;;  %628 = vmatpush.msra.mxu1 %v115_v15  ;;  %649 = vmatpush.msra.mxu2 %v145_v17  ;;  %v175_v22 = vld [vmem:[#allocation4 + $0x3a0] sm:$0xff] }
  0x18   :  { %v113_v19 = vld [vmem:[#allocation4 + $0x1b0] sm:$0xff]  ;;  %v111_v23 = vld [vmem:[#allocation4 + $0x1a0] sm:$0xff]  ;;  %669 = vmatpush.msra.mxu3 %v177_v18  ;;  %610 = vmatpush.msra.mxu0 %v79_v20 }
  0x19   :  { %629 = vmatpush.msra.mxu1 %v113_v19  ;;  %v77_v24 = vld [vmem:[#allocation4 + $0x90] sm:$0xff]  ;;  %650 = vmatpush.msra.mxu2 %v143_v21  ;;  %v75_v28 = vld [vmem:[#allocation4 + $0x80] sm:$0xff] }
  0x1a   :  { %v141_v25 = vld [vmem:[#allocation4 + $0x290] sm:$0xff]  ;;  %670 = vmatpush.msra.mxu3 %v175_v22  ;;  %v139_v29 = vld [vmem:[#allocation4 + $0x280] sm:$0xff]  ;;  %611 = vmatpush.msra.mxu0 %v77_v24 }
  0x1b   :  { %v173_v26 = vld [vmem:[#allocation4 + $0x390] sm:$0xff]  ;;  %630 = vmatpush.msra.mxu1 %v111_v23  ;;  %651 = vmatpush.msra.mxu2 %v141_v25  ;;  %v171_v30 = vld [vmem:[#allocation4 + $0x380] sm:$0xff] }
  0x1c   :  { %v109_v27 = vld [vmem:[#allocation4 + $0x190] sm:$0xff]  ;;  %v107_v31 = vld [vmem:[#allocation4 + $0x180] sm:$0xff]  ;;  %671 = vmatpush.msra.mxu3 %v173_v26  ;;  %612 = vmatpush.msra.mxu0 %v75_v28 }
  0x1d   :  { %631 = vmatpush.msra.mxu1 %v109_v27  ;;  %v73_v32 = vld [vmem:[#allocation4 + $0x70] sm:$0xff]  ;;  %652 = vmatpush.msra.mxu2 %v139_v29  ;;  %v71_v36 = vld [vmem:[#allocation4 + $0x60] sm:$0xff] }
  0x1e   :  { %v137_v33 = vld [vmem:[#allocation4 + $0x270] sm:$0xff]  ;;  %672 = vmatpush.msra.mxu3 %v171_v30  ;;  %v135_v37 = vld [vmem:[#allocation4 + $0x260] sm:$0xff]  ;;  %613 = vmatpush.msra.mxu0 %v73_v32 }
  0x1f   :  { %v169_v34 = vld [vmem:[#allocation4 + $0x370] sm:$0xff]  ;;  %632 = vmatpush.msra.mxu1 %v107_v31  ;;  %653 = vmatpush.msra.mxu2 %v137_v33  ;;  %v167_v38 = vld [vmem:[#allocation4 + $0x360] sm:$0xff] }
  0x20   :  { %v105_v35 = vld [vmem:[#allocation4 + $0x170] sm:$0xff]  ;;  %v103_v39 = vld [vmem:[#allocation4 + $0x160] sm:$0xff]  ;;  %673 = vmatpush.msra.mxu3 %v169_v34  ;;  %614 = vmatpush.msra.mxu0 %v71_v36 }
  0x21   :  { %633 = vmatpush.msra.mxu1 %v105_v35  ;;  %v69_v40 = vld [vmem:[#allocation4 + $0x50] sm:$0xff]  ;;  %654 = vmatpush.msra.mxu2 %v135_v37  ;;  %v67_v44 = vld [vmem:[#allocation4 + $0x40] sm:$0xff] }
  0x22   :  { %v133_v41 = vld [vmem:[#allocation4 + $0x250] sm:$0xff]  ;;  %674 = vmatpush.msra.mxu3 %v167_v38  ;;  %v131_v45 = vld [vmem:[#allocation4 + $0x240] sm:$0xff]  ;;  %615 = vmatpush.msra.mxu0 %v69_v40 }
  0x23   :  { %v165_v42 = vld [vmem:[#allocation4 + $0x350] sm:$0xff]  ;;  %634 = vmatpush.msra.mxu1 %v103_v39  ;;  %655 = vmatpush.msra.mxu2 %v133_v41  ;;  %v163_v46 = vld [vmem:[#allocation4 + $0x340] sm:$0xff] }
  0x24   :  { %v101_v43 = vld [vmem:[#allocation4 + $0x150] sm:$0xff]  ;;  %v99_v47 = vld [vmem:[#allocation4 + $0x140] sm:$0xff]  ;;  %675 = vmatpush.msra.mxu3 %v165_v42  ;;  %616 = vmatpush.msra.mxu0 %v67_v44 }
  0x25   :  { %635 = vmatpush.msra.mxu1 %v101_v43  ;;  %v65_v48 = vld [vmem:[#allocation4 + $0x30] sm:$0xff]  ;;  %656 = vmatpush.msra.mxu2 %v131_v45  ;;  %v63_v52 = vld [vmem:[#allocation4 + $0x20] sm:$0xff] }
  0x26   :  { %v129_v49 = vld [vmem:[#allocation4 + $0x230] sm:$0xff]  ;;  %676 = vmatpush.msra.mxu3 %v163_v46  ;;  %v127_v53 = vld [vmem:[#allocation4 + $0x220] sm:$0xff]  ;;  %617 = vmatpush.msra.mxu0 %v65_v48 }
  0x27   :  { %v161_v50 = vld [vmem:[#allocation4 + $0x330] sm:$0xff]  ;;  %636 = vmatpush.msra.mxu1 %v99_v47  ;;  %657 = vmatpush.msra.mxu2 %v129_v49  ;;  %v159_v54 = vld [vmem:[#allocation4 + $0x320] sm:$0xff] }
  0x28   :  { %v97_v51 = vld [vmem:[#allocation4 + $0x130] sm:$0xff]  ;;  %v95_v55 = vld [vmem:[#allocation4 + $0x120] sm:$0xff]  ;;  %677 = vmatpush.msra.mxu3 %v161_v50  ;;  %618 = vmatpush.msra.mxu0 %v63_v52 }
  0x29   :  { %637 = vmatpush.msra.mxu1 %v97_v51  ;;  %v61_v56 = vld [vmem:[#allocation4 + $0x10] sm:$0xff]  ;;  %658 = vmatpush.msra.mxu2 %v127_v53  ;;  %v59_v60 = vld [vmem:[#allocation4] sm:$0xff] }
  0x2a   :  { %v125_v57 = vld [vmem:[#allocation4 + $0x210] sm:$0xff]  ;;  %678 = vmatpush.msra.mxu3 %v159_v54  ;;  %v123_v61 = vld [vmem:[#allocation4 + $0x200] sm:$0xff]  ;;  %619 = vmatpush.msra.mxu0 %v61_v56 }
  0x2b   :  { %v157_v58 = vld [vmem:[#allocation4 + $0x310] sm:$0xff]  ;;  %638 = vmatpush.msra.mxu1 %v95_v55  ;;  %659 = vmatpush.msra.mxu2 %v125_v57  ;;  %v155_v62 = vld [vmem:[#allocation4 + $0x300] sm:$0xff] }
  0x2c   :  { %v93_v59 = vld [vmem:[#allocation4 + $0x110] sm:$0xff]  ;;  %679 = vmatpush.msra.mxu3 %v157_v58  ;;  %620 = vmatpush.msra.mxu0 %v59_v60  ;;  %v91_v2 = vld [vmem:[#allocation4 + $0x100] sm:$0xff] }
  0x2d   :  { %v217_v63 = vld [vmem:[#allocation4 + $0x4f0] sm:$0xff]  ;;  %639 = vmatpush.msra.mxu1 %v93_v59  ;;  %660 = vmatpush.msra.mxu2 %v123_v61  ;;  %v215_v3 = vld [vmem:[#allocation4 + $0x4e0] sm:$0xff] }
  0x2e   :  { %v281_v0 = vld [vmem:[#allocation4 + $0x6f0] sm:$0xff]  ;;  %680 = vmatpush.msra.mxu3 %v155_v62  ;;  %685 = vmatpush.msrb.mxu0 %v217_v63  ;;  %v279_v5 = vld [vmem:[#allocation4 + $0x6e0] sm:$0xff] }
  0x2f   :  { %v313_v1 = vld [vmem:[#allocation4 + $0x7f0] sm:$0xff]  ;;  %725 = vmatpush.msrb.mxu2 %v281_v0  ;;  %v311_v6 = vld [vmem:[#allocation4 + $0x7e0] sm:$0xff]  ;;  %640 = vmatpush.msra.mxu1 %v91_v2 }
  0x30   :  { %v249_v4 = vld [vmem:[#allocation4 + $0x5f0] sm:$0xff]  ;;  %745 = vmatpush.msrb.mxu3 %v313_v1  ;;  %686 = vmatpush.msrb.mxu0 %v215_v3  ;;  %v247_v8 = vld [vmem:[#allocation4 + $0x5e0] sm:$0xff] }
  0x31   :  { %v213_v7 = vld [vmem:[#allocation4 + $0x4d0] sm:$0xff]  ;;  %705 = vmatpush.msrb.mxu1 %v249_v4  ;;  %726 = vmatpush.msrb.mxu2 %v279_v5  ;;  %v211_v11 = vld [vmem:[#allocation4 + $0x4c0] sm:$0xff] }
  0x32   :  { %v277_v9 = vld [vmem:[#allocation4 + $0x6d0] sm:$0xff]  ;;  %746 = vmatpush.msrb.mxu3 %v311_v6  ;;  %687 = vmatpush.msrb.mxu0 %v213_v7  ;;  %v275_v13 = vld [vmem:[#allocation4 + $0x6c0] sm:$0xff] }
  0x33   :  { %v309_v10 = vld [vmem:[#allocation4 + $0x7d0] sm:$0xff]  ;;  %706 = vmatpush.msrb.mxu1 %v247_v8  ;;  %727 = vmatpush.msrb.mxu2 %v277_v9  ;;  %v307_v14 = vld [vmem:[#allocation4 + $0x7c0] sm:$0xff] }
  0x34   :  { %v245_v12 = vld [vmem:[#allocation4 + $0x5d0] sm:$0xff]  ;;  %747 = vmatpush.msrb.mxu3 %v309_v10  ;;  %688 = vmatpush.msrb.mxu0 %v211_v11  ;;  %v243_v16 = vld [vmem:[#allocation4 + $0x5c0] sm:$0xff] }
  0x35   :  { %v209_v15 = vld [vmem:[#allocation4 + $0x4b0] sm:$0xff]  ;;  %707 = vmatpush.msrb.mxu1 %v245_v12  ;;  %728 = vmatpush.msrb.mxu2 %v275_v13  ;;  %v207_v19 = vld [vmem:[#allocation4 + $0x4a0] sm:$0xff] }
  0x36   :  { %v273_v17 = vld [vmem:[#allocation4 + $0x6b0] sm:$0xff]  ;;  %748 = vmatpush.msrb.mxu3 %v307_v14  ;;  %689 = vmatpush.msrb.mxu0 %v209_v15  ;;  %v271_v21 = vld [vmem:[#allocation4 + $0x6a0] sm:$0xff] }
  0x37   :  { %v305_v18 = vld [vmem:[#allocation4 + $0x7b0] sm:$0xff]  ;;  %708 = vmatpush.msrb.mxu1 %v243_v16  ;;  %729 = vmatpush.msrb.mxu2 %v273_v17  ;;  %v303_v22 = vld [vmem:[#allocation4 + $0x7a0] sm:$0xff] }
  0x38   :  { %v241_v20 = vld [vmem:[#allocation4 + $0x5b0] sm:$0xff]  ;;  %749 = vmatpush.msrb.mxu3 %v305_v18  ;;  %690 = vmatpush.msrb.mxu0 %v207_v19  ;;  %v239_v24 = vld [vmem:[#allocation4 + $0x5a0] sm:$0xff] }
  0x39   :  { %v205_v23 = vld [vmem:[#allocation4 + $0x490] sm:$0xff]  ;;  %709 = vmatpush.msrb.mxu1 %v241_v20  ;;  %730 = vmatpush.msrb.mxu2 %v271_v21  ;;  %v203_v27 = vld [vmem:[#allocation4 + $0x480] sm:$0xff] }
  0x3a   :  { %v269_v25 = vld [vmem:[#allocation4 + $0x690] sm:$0xff]  ;;  %750 = vmatpush.msrb.mxu3 %v303_v22  ;;  %691 = vmatpush.msrb.mxu0 %v205_v23  ;;  %v267_v29 = vld [vmem:[#allocation4 + $0x680] sm:$0xff] }
  0x3b   :  { %v301_v26 = vld [vmem:[#allocation4 + $0x790] sm:$0xff]  ;;  %710 = vmatpush.msrb.mxu1 %v239_v24  ;;  %731 = vmatpush.msrb.mxu2 %v269_v25  ;;  %v299_v30 = vld [vmem:[#allocation4 + $0x780] sm:$0xff] }
  0x3c   :  { %v237_v28 = vld [vmem:[#allocation4 + $0x590] sm:$0xff]  ;;  %751 = vmatpush.msrb.mxu3 %v301_v26  ;;  %692 = vmatpush.msrb.mxu0 %v203_v27  ;;  %v235_v32 = vld [vmem:[#allocation4 + $0x580] sm:$0xff] }
  0x3d   :  { %v201_v31 = vld [vmem:[#allocation4 + $0x470] sm:$0xff]  ;;  %711 = vmatpush.msrb.mxu1 %v237_v28  ;;  %732 = vmatpush.msrb.mxu2 %v267_v29  ;;  %v199_v35 = vld [vmem:[#allocation4 + $0x460] sm:$0xff] }
  0x3e   :  { %v265_v33 = vld [vmem:[#allocation4 + $0x670] sm:$0xff]  ;;  %752 = vmatpush.msrb.mxu3 %v299_v30  ;;  %693 = vmatpush.msrb.mxu0 %v201_v31  ;;  %v263_v37 = vld [vmem:[#allocation4 + $0x660] sm:$0xff] }
  0x3f   :  { %v297_v34 = vld [vmem:[#allocation4 + $0x770] sm:$0xff]  ;;  %712 = vmatpush.msrb.mxu1 %v235_v32  ;;  %733 = vmatpush.msrb.mxu2 %v265_v33  ;;  %v295_v38 = vld [vmem:[#allocation4 + $0x760] sm:$0xff] }
  0x40   :  { %v233_v36 = vld [vmem:[#allocation4 + $0x570] sm:$0xff]  ;;  %753 = vmatpush.msrb.mxu3 %v297_v34  ;;  %694 = vmatpush.msrb.mxu0 %v199_v35  ;;  %v231_v40 = vld [vmem:[#allocation4 + $0x560] sm:$0xff] }
  0x41   :  { %v197_v39 = vld [vmem:[#allocation4 + $0x450] sm:$0xff]  ;;  %713 = vmatpush.msrb.mxu1 %v233_v36  ;;  %734 = vmatpush.msrb.mxu2 %v263_v37  ;;  %v195_v43 = vld [vmem:[#allocation4 + $0x440] sm:$0xff] }
  0x42   :  { %v261_v41 = vld [vmem:[#allocation4 + $0x650] sm:$0xff]  ;;  %754 = vmatpush.msrb.mxu3 %v295_v38  ;;  %695 = vmatpush.msrb.mxu0 %v197_v39  ;;  %v259_v45 = vld [vmem:[#allocation4 + $0x640] sm:$0xff] }
  0x43   :  { %v293_v42 = vld [vmem:[#allocation4 + $0x750] sm:$0xff]  ;;  %714 = vmatpush.msrb.mxu1 %v231_v40  ;;  %735 = vmatpush.msrb.mxu2 %v261_v41  ;;  %v291_v46 = vld [vmem:[#allocation4 + $0x740] sm:$0xff] }
  0x44   :  { %v229_v44 = vld [vmem:[#allocation4 + $0x550] sm:$0xff]  ;;  %755 = vmatpush.msrb.mxu3 %v293_v42  ;;  %696 = vmatpush.msrb.mxu0 %v195_v43  ;;  %v227_v48 = vld [vmem:[#allocation4 + $0x540] sm:$0xff] }
  0x45   :  { %v193_v47 = vld [vmem:[#allocation4 + $0x430] sm:$0xff]  ;;  %715 = vmatpush.msrb.mxu1 %v229_v44  ;;  %736 = vmatpush.msrb.mxu2 %v259_v45  ;;  %v191_v51 = vld [vmem:[#allocation4 + $0x420] sm:$0xff] }
  0x46   :  { %v257_v49 = vld [vmem:[#allocation4 + $0x630] sm:$0xff]  ;;  %756 = vmatpush.msrb.mxu3 %v291_v46  ;;  %697 = vmatpush.msrb.mxu0 %v193_v47  ;;  %v255_v54 = vld [vmem:[#allocation4 + $0x620] sm:$0xff] }
  0x47   :  { %v289_v50 = vld [vmem:[#allocation4 + $0x730] sm:$0xff]  ;;  %716 = vmatpush.msrb.mxu1 %v227_v48  ;;  %737 = vmatpush.msrb.mxu2 %v257_v49  ;;  %v287_v55 = vld [vmem:[#allocation4 + $0x720] sm:$0xff] }
  0x48   :  { %v1381_v52 = vld [vmem:[#allocation2] sm:$0xff]  ;;  %757 = vmatpush.msrb.mxu3 %v289_v50  ;;  %698 = vmatpush.msrb.mxu0 %v191_v51  ;;  %v223_v57 = vld [vmem:[#allocation4 + $0x520] sm:$0xff] }
  0x49   :  { %v225_v53 = vld [vmem:[#allocation4 + $0x530] sm:$0xff]  ;;  %v568_v59 = vperm.slane %v1381_v52, 2  ;;  %738 = vmatpush.msrb.mxu2 %v255_v54  ;;  %v187_v61 = vld [vmem:[#allocation4 + $0x400] sm:$0xff]  ;;  %v566_v1 = vperm.slane %v1381_v52, 0  ;;  %v569_v2 = vperm.slane %v1381_v52, 3  ;;  %v567_v7 = vperm.slane %v1381_v52, 1 }
  0x4a   :  { %v189_v56 = vld [vmem:[#allocation4 + $0x410] sm:$0xff]  ;;  %717 = vmatpush.msrb.mxu1 %v225_v53  ;;  %758 = vmatpush.msrb.mxu3 %v287_v55  ;;  %v251_v63 = vld [vmem:[#allocation4 + $0x600] sm:$0xff]  ;;  %v572_v15 = vperm.slane %v1381_v52, 6  ;;  %v570_v21 = vperm.slane %v1381_v52, 4  ;;  %v573_v22 = vperm.slane %v1381_v52, 7  ;;  %v571_v27 = vperm.slane %v1381_v52, 5 }
  0x4b   :  { %v253_v58 = vld [vmem:[#allocation4 + $0x610] sm:$0xff]  ;;  %699 = vmatpush.msrb.mxu0 %v189_v56  ;;  %v283_v0 = vld [vmem:[#allocation4 + $0x700] sm:$0xff]  ;;  %661 = vmatmul.f32.vlgmr.msra.gmra.mxu2 %v568_v59  ;;  %v396_v52 = vld [vmem:[#allocation4 + $0xa88] sm:$0xff] }
  0x4c   :  { %v285_v60 = vld [vmem:[#allocation4 + $0x710] sm:$0xff]  ;;  %718 = vmatpush.msrb.mxu1 %v223_v57  ;;  %739 = vmatpush.msrb.mxu2 %v253_v58  ;;  %v219_v6 = vld [vmem:[#allocation4 + $0x500] sm:$0xff] }
  0x4d   :  { %v221_v62 = vld [vmem:[#allocation4 + $0x510] sm:$0xff]  ;;  %759 = vmatpush.msrb.mxu3 %v285_v60  ;;  %700 = vmatpush.msrb.mxu0 %v187_v61  ;;  %v343_v8 = vld [vmem:[#allocation4 + $0x8e0] sm:$0xff] }
  0x4e   :  { %719 = vmatpush.msrb.mxu1 %v221_v62  ;;  %v345_v3 = vld [vmem:[#allocation4 + $0x8f0] sm:$0xff]  ;;  %740 = vmatpush.msrb.mxu2 %v251_v63  ;;  %v407_v10 = vld [vmem:[#allocation4 + $0xae0] sm:$0xff] }
  0x4f   :  { %v409_v4 = vld [vmem:[#allocation4 + $0xaf0] sm:$0xff]  ;;  %760 = vmatpush.msrb.mxu3 %v283_v0  ;;  %621 = vmatmul.f32.vlgmr.msra.gmra.mxu0 %v566_v1  ;;  %v439_v11 = vld [vmem:[#allocation4 + $0xbe0] sm:$0xff] }
  0x50   :  { %v441_v5 = vld [vmem:[#allocation4 + $0xbf0] sm:$0xff]  ;;  %681 = vmatmul.f32.vlgmr.msra.gmra.mxu3 %v569_v2  ;;  %765 = vmatpush.msra.mxu0 %v345_v3  ;;  %v375_v13 = vld [vmem:[#allocation4 + $0x9e0] sm:$0xff] }
  0x51   :  { %805 = vmatpush.msra.mxu2 %v409_v4  ;;  %v377_v9 = vld [vmem:[#allocation4 + $0x9f0] sm:$0xff]  ;;  %825 = vmatpush.msra.mxu3 %v441_v5  ;;  %v339_v17 = vld [vmem:[#allocation4 + $0x8c0] sm:$0xff]  ;;  %v1407_v5 = vld [vmem:[#allocation2 + $0x8] sm:$0xff] }
  0x52   :  { %720 = vmatpush.msrb.mxu1 %v219_v6  ;;  %v341_v12 = vld [vmem:[#allocation4 + $0x8d0] sm:$0xff]  ;;  %766 = vmatpush.msra.mxu0 %v343_v8  ;;  %v403_v19 = vld [vmem:[#allocation4 + $0xac0] sm:$0xff] }
  0x53   :  { %641 = vmatmul.f32.vlgmr.msra.gmra.mxu1 %v567_v7  ;;  %v405_v14 = vld [vmem:[#allocation4 + $0xad0] sm:$0xff]  ;;  %806 = vmatpush.msra.mxu2 %v407_v10  ;;  %v435_v20 = vld [vmem:[#allocation4 + $0xbc0] sm:$0xff] }
  0x54   :  { %785 = vmatpush.msra.mxu1 %v377_v9  ;;  %v437_v16 = vld [vmem:[#allocation4 + $0xbd0] sm:$0xff]  ;;  %826 = vmatpush.msra.mxu3 %v439_v11  ;;  %v371_v24 = vld [vmem:[#allocation4 + $0x9c0] sm:$0xff] }
  0x55   :  { %767 = vmatpush.msra.mxu0 %v341_v12  ;;  %v373_v18 = vld [vmem:[#allocation4 + $0x9d0] sm:$0xff]  ;;  %807 = vmatpush.msra.mxu2 %v405_v14  ;;  %v335_v28 = vld [vmem:[#allocation4 + $0x8a0] sm:$0xff] }
  0x56   :  { %786 = vmatpush.msra.mxu1 %v375_v13  ;;  %827 = vmatpush.msra.mxu3 %v437_v16  ;;  %v337_v23 = vld [vmem:[#allocation4 + $0x8b0] sm:$0xff]  ;;  %v399_v30 = vld [vmem:[#allocation4 + $0xaa0] sm:$0xff]  ;;  %v574_v13 = vperm.slane %v1407_v5, 0  ;;  %v576_v16 = vperm.slane %v1407_v5, 2 }
  0x57   :  { %741 = vmatmul.f32.vlgmr.msrb.gmra.mxu2 %v572_v15  ;;  %768 = vmatpush.msra.mxu0 %v339_v17  ;;  %v401_v25 = vld [vmem:[#allocation4 + $0xab0] sm:$0xff]  ;;  %v431_v31 = vld [vmem:[#allocation4 + $0xba0] sm:$0xff] }
  0x58   :  { %787 = vmatpush.msra.mxu1 %v373_v18  ;;  %808 = vmatpush.msra.mxu2 %v403_v19  ;;  %v433_v26 = vld [vmem:[#allocation4 + $0xbb0] sm:$0xff]  ;;  %v367_v33 = vld [vmem:[#allocation4 + $0x9a0] sm:$0xff] }
  0x59   :  { %828 = vmatpush.msra.mxu3 %v435_v20  ;;  %701 = vmatmul.f32.vlgmr.msrb.gmra.mxu0 %v570_v21  ;;  %v369_v29 = vld [vmem:[#allocation4 + $0x9b0] sm:$0xff]  ;;  %v331_v36 = vld [vmem:[#allocation4 + $0x880] sm:$0xff]  ;;  %v577_v20 = vperm.slane %v1407_v5, 3 }
  0x5a   :  { %761 = vmatmul.f32.vlgmr.msrb.gmra.mxu3 %v573_v22  ;;  %769 = vmatpush.msra.mxu0 %v337_v23  ;;  %v333_v32 = vld [vmem:[#allocation4 + $0x890] sm:$0xff]  ;;  %v395_v38 = vld [vmem:[#allocation4 + $0xa80] sm:$0xff] }
  0x5b   :  { %788 = vmatpush.msra.mxu1 %v371_v24  ;;  %809 = vmatpush.msra.mxu2 %v401_v25  ;;  %v397_v34 = vld [vmem:[#allocation4 + $0xa90] sm:$0xff]  ;;  %v427_v39 = vld [vmem:[#allocation4 + $0xb80] sm:$0xff]  ;;  %v575_v24 = vperm.slane %v1407_v5, 1 }
  0x5c   :  { %829 = vmatpush.msra.mxu3 %v433_v26  ;;  %721 = vmatmul.f32.vlgmr.msrb.gmra.mxu1 %v571_v27  ;;  %v429_v35 = vld [vmem:[#allocation4 + $0xb90] sm:$0xff]  ;;  %v363_v41 = vld [vmem:[#allocation4 + $0x980] sm:$0xff] }
  0x5d   :  { %770 = vmatpush.msra.mxu0 %v335_v28  ;;  %789 = vmatpush.msra.mxu1 %v369_v29  ;;  %v365_v37 = vld [vmem:[#allocation4 + $0x990] sm:$0xff]  ;;  %v327_v44 = vld [vmem:[#allocation4 + $0x860] sm:$0xff] }
  0x5e   :  { %810 = vmatpush.msra.mxu2 %v399_v30  ;;  %830 = vmatpush.msra.mxu3 %v431_v31  ;;  %v329_v40 = vld [vmem:[#allocation4 + $0x870] sm:$0xff]  ;;  %v391_v46 = vld [vmem:[#allocation4 + $0xa60] sm:$0xff] }
  0x5f   :  { %771 = vmatpush.msra.mxu0 %v333_v32  ;;  %790 = vmatpush.msra.mxu1 %v367_v33  ;;  %v393_v42 = vld [vmem:[#allocation4 + $0xa70] sm:$0xff]  ;;  %v423_v47 = vld [vmem:[#allocation4 + $0xb60] sm:$0xff] }
  0x60   :  { %811 = vmatpush.msra.mxu2 %v397_v34  ;;  %831 = vmatpush.msra.mxu3 %v429_v35  ;;  %v425_v43 = vld [vmem:[#allocation4 + $0xb70] sm:$0xff]  ;;  %v359_v49 = vld [vmem:[#allocation4 + $0x960] sm:$0xff] }
  0x61   :  { %772 = vmatpush.msra.mxu0 %v331_v36  ;;  %791 = vmatpush.msra.mxu1 %v365_v37  ;;  %v361_v45 = vld [vmem:[#allocation4 + $0x970] sm:$0xff]  ;;  %v323_v53 = vld [vmem:[#allocation4 + $0x840] sm:$0xff] }
  0x62   :  { %812 = vmatpush.msra.mxu2 %v395_v38  ;;  %832 = vmatpush.msra.mxu3 %v427_v39  ;;  %v325_v48 = vld [vmem:[#allocation4 + $0x850] sm:$0xff]  ;;  %v387_v55 = vld [vmem:[#allocation4 + $0xa40] sm:$0xff] }
  0x63   :  { %773 = vmatpush.msra.mxu0 %v329_v40  ;;  %792 = vmatpush.msra.mxu1 %v363_v41  ;;  %v389_v50 = vld [vmem:[#allocation4 + $0xa50] sm:$0xff]  ;;  %v419_v56 = vld [vmem:[#allocation4 + $0xb40] sm:$0xff] }
  0x64   :  { %813 = vmatpush.msra.mxu2 %v393_v42  ;;  %833 = vmatpush.msra.mxu3 %v425_v43  ;;  %v421_v51 = vld [vmem:[#allocation4 + $0xb50] sm:$0xff]  ;;  %v355_v58 = vld [vmem:[#allocation4 + $0x940] sm:$0xff] }
  0x65   :  { %774 = vmatpush.msra.mxu0 %v327_v44  ;;  %793 = vmatpush.msra.mxu1 %v361_v45  ;;  %v357_v54 = vld [vmem:[#allocation4 + $0x950] sm:$0xff]  ;;  %v319_v62 = vld [vmem:[#allocation4 + $0x820] sm:$0xff] }
  0x66   :  { %814 = vmatpush.msra.mxu2 %v391_v46  ;;  %834 = vmatpush.msra.mxu3 %v423_v47  ;;  %v321_v57 = vld [vmem:[#allocation4 + $0x830] sm:$0xff]  ;;  %v383_v0 = vld [vmem:[#allocation4 + $0xa20] sm:$0xff] }
  0x67   :  { %775 = vmatpush.msra.mxu0 %v325_v48  ;;  %794 = vmatpush.msra.mxu1 %v359_v49  ;;  %v385_v60 = vld [vmem:[#allocation4 + $0xa30] sm:$0xff]  ;;  %v415_v3 = vld [vmem:[#allocation4 + $0xb20] sm:$0xff] }
  0x68   :  { %815 = vmatpush.msra.mxu2 %v389_v50  ;;  %835 = vmatpush.msra.mxu3 %v421_v51  ;;  %v417_v61 = vld [vmem:[#allocation4 + $0xb30] sm:$0xff]  ;;  %v351_v6 = vld [vmem:[#allocation4 + $0x920] sm:$0xff] }
  0x69   :  { %776 = vmatpush.msra.mxu0 %v323_v53  ;;  %795 = vmatpush.msra.mxu1 %v357_v54  ;;  %v353_v63 = vld [vmem:[#allocation4 + $0x930] sm:$0xff]  ;;  %v315_v10 = vld [vmem:[#allocation4 + $0x800] sm:$0xff] }
  0x6a   :  { %816 = vmatpush.msra.mxu2 %v387_v55  ;;  %836 = vmatpush.msra.mxu3 %v419_v56  ;;  %v317_v4 = vld [vmem:[#allocation4 + $0x810] sm:$0xff]  ;;  %v379_v12 = vld [vmem:[#allocation4 + $0xa00] sm:$0xff] }
  0x6b   :  { %777 = vmatpush.msra.mxu0 %v321_v57  ;;  %796 = vmatpush.msra.mxu1 %v355_v58  ;;  %v381_v8 = vld [vmem:[#allocation4 + $0xa10] sm:$0xff]  ;;  %v411_v14 = vld [vmem:[#allocation4 + $0xb00] sm:$0xff] }
  0x6c   :  { %817 = vmatpush.msra.mxu2 %v385_v60  ;;  %837 = vmatpush.msra.mxu3 %v417_v61  ;;  %v413_v9 = vld [vmem:[#allocation4 + $0xb10] sm:$0xff]  ;;  %v347_v23 = vld [vmem:[#allocation4 + $0x900] sm:$0xff] }
  0x6d   :  { %778 = vmatpush.msra.mxu0 %v319_v62  ;;  %797 = vmatpush.msra.mxu1 %v353_v63  ;;  %v349_v11 = vld [vmem:[#allocation4 + $0x910] sm:$0xff]  ;;  %v471_v25 = vld [vmem:[#allocation4 + $0xce0] sm:$0xff] }
  0x6e   :  { %818 = vmatpush.msra.mxu2 %v383_v0  ;;  %838 = vmatpush.msra.mxu3 %v415_v3  ;;  %v473_v17 = vld [vmem:[#allocation4 + $0xcf0] sm:$0xff]  ;;  %v535_v28 = vld [vmem:[#allocation4 + $0xee0] sm:$0xff] }
  0x6f   :  { %779 = vmatpush.msra.mxu0 %v317_v4  ;;  %798 = vmatpush.msra.mxu1 %v351_v6  ;;  %v537_v18 = vld [vmem:[#allocation4 + $0xef0] sm:$0xff]  ;;  %v559_v29 = vld [vmem:[#allocation4 + $0xfa0] sm:$0xff] }
  0x70   :  { %819 = vmatpush.msra.mxu2 %v381_v8  ;;  %839 = vmatpush.msra.mxu3 %v413_v9  ;;  %v561_v19 = vld [vmem:[#allocation4 + $0xfb0] sm:$0xff]  ;;  %v503_v31 = vld [vmem:[#allocation4 + $0xde0] sm:$0xff] }
  0x71   :  { %780 = vmatpush.msra.mxu0 %v315_v10  ;;  %799 = vmatpush.msra.mxu1 %v349_v11  ;;  %v505_v26 = vld [vmem:[#allocation4 + $0xdf0] sm:$0xff]  ;;  %v467_v34 = vld [vmem:[#allocation4 + $0xcc0] sm:$0xff] }
  0x72   :  { %820 = vmatpush.msra.mxu2 %v379_v12  ;;  %840 = vmatpush.msra.mxu3 %v411_v14  ;;  %v469_v30 = vld [vmem:[#allocation4 + $0xcd0] sm:$0xff]  ;;  %v531_v36 = vld [vmem:[#allocation4 + $0xec0] sm:$0xff]  ;;  %v90_v14 = vld [vmem:[#allocation4 + $0xf8] sm:$0xff] }
  0x73   :  { %781 = vmatmul.f32.vlgmr.msra.gmra.mxu0 %v574_v13  ;;  %821 = vmatmul.f32.vlgmr.msra.gmra.mxu2 %v576_v16  ;;  %v533_v32 = vld [vmem:[#allocation4 + $0xed0] sm:$0xff]  ;;  %v555_v37 = vld [vmem:[#allocation4 + $0xf80] sm:$0xff] }
  0x74   :  { %845 = vmatpush.msrb.mxu0 %v473_v17  ;;  %885 = vmatpush.msrb.mxu2 %v537_v18  ;;  %v557_v33 = vld [vmem:[#allocation4 + $0xf90] sm:$0xff]  ;;  %v499_v39 = vld [vmem:[#allocation4 + $0xdc0] sm:$0xff] }
  0x75   :  { %909 = vmatpush.msrb.mxu3 %v561_v19  ;;  %800 = vmatpush.msra.mxu1 %v347_v23  ;;  %v501_v35 = vld [vmem:[#allocation4 + $0xdd0] sm:$0xff]  ;;  %v463_v42 = vld [vmem:[#allocation4 + $0xca0] sm:$0xff]  ;;  %v88_v23 = vld [vmem:[#allocation4 + $0xe8] sm:$0xff] }
  0x76   :  { %841 = vmatmul.f32.vlgmr.msra.gmra.mxu3 %v577_v20  ;;  %801 = vmatmul.f32.vlgmr.msra.gmra.mxu1 %v575_v24  ;;  %v465_v38 = vld [vmem:[#allocation4 + $0xcb0] sm:$0xff]  ;;  %v527_v44 = vld [vmem:[#allocation4 + $0xea0] sm:$0xff] }
  0x77   :  { %846 = vmatpush.msrb.mxu0 %v471_v25  ;;  %865 = vmatpush.msrb.mxu1 %v505_v26  ;;  %v529_v40 = vld [vmem:[#allocation4 + $0xeb0] sm:$0xff]  ;;  %v551_v45 = vld [vmem:[#allocation4 + $0xf60] sm:$0xff] }
  0x78   :  { %886 = vmatpush.msrb.mxu2 %v535_v28  ;;  %910 = vmatpush.msrb.mxu3 %v559_v29  ;;  %v553_v41 = vld [vmem:[#allocation4 + $0xf70] sm:$0xff]  ;;  %v495_v47 = vld [vmem:[#allocation4 + $0xda0] sm:$0xff]  ;;  %v86_v29 = vld [vmem:[#allocation4 + $0xd8] sm:$0xff] }
  0x79   :  { %847 = vmatpush.msrb.mxu0 %v469_v30  ;;  %866 = vmatpush.msrb.mxu1 %v503_v31  ;;  %v497_v43 = vld [vmem:[#allocation4 + $0xdb0] sm:$0xff]  ;;  %v459_v50 = vld [vmem:[#allocation4 + $0xc80] sm:$0xff] }
  0x7a   :  { %887 = vmatpush.msrb.mxu2 %v533_v32  ;;  %911 = vmatpush.msrb.mxu3 %v557_v33  ;;  %v461_v46 = vld [vmem:[#allocation4 + $0xc90] sm:$0xff]  ;;  %v523_v53 = vld [vmem:[#allocation4 + $0xe80] sm:$0xff]  ;;  %v84_v33 = vld [vmem:[#allocation4 + $0xc8] sm:$0xff] }
  0x7b   :  { %848 = vmatpush.msrb.mxu0 %v467_v34  ;;  %867 = vmatpush.msrb.mxu1 %v501_v35  ;;  %v525_v48 = vld [vmem:[#allocation4 + $0xe90] sm:$0xff]  ;;  %v547_v54 = vld [vmem:[#allocation4 + $0xf40] sm:$0xff]  ;;  %v578_v35 = vperm.slane %v1407_v5, 4 }
  0x7c   :  { %888 = vmatpush.msrb.mxu2 %v531_v36  ;;  %912 = vmatpush.msrb.mxu3 %v555_v37  ;;  %v549_v49 = vld [vmem:[#allocation4 + $0xf50] sm:$0xff]  ;;  %v491_v56 = vld [vmem:[#allocation4 + $0xd80] sm:$0xff]  ;;  %v580_v37 = vperm.slane %v1407_v5, 6 }
  0x7d   :  { %849 = vmatpush.msrb.mxu0 %v465_v38  ;;  %868 = vmatpush.msrb.mxu1 %v499_v39  ;;  %v493_v51 = vld [vmem:[#allocation4 + $0xd90] sm:$0xff]  ;;  %v455_v60 = vld [vmem:[#allocation4 + $0xc60] sm:$0xff]  ;;  %v82_v38 = vld [vmem:[#allocation4 + $0xb8] sm:$0xff] }
  0x7e   :  { %889 = vmatpush.msrb.mxu2 %v529_v40  ;;  %913 = vmatpush.msrb.mxu3 %v553_v41  ;;  %v457_v55 = vld [vmem:[#allocation4 + $0xc70] sm:$0xff]  ;;  %v519_v62 = vld [vmem:[#allocation4 + $0xe60] sm:$0xff]  ;;  %v122_v39 = vld [vmem:[#allocation4 + $0x1f8] sm:$0xff]  ;;  %v581_v41 = vperm.slane %v1407_v5, 7 }
  0x7f   :  { %850 = vmatpush.msrb.mxu0 %v463_v42  ;;  %869 = vmatpush.msrb.mxu1 %v497_v43  ;;  %v521_v57 = vld [vmem:[#allocation4 + $0xe70] sm:$0xff]  ;;  %v543_v63 = vld [vmem:[#allocation4 + $0xf20] sm:$0xff]  ;;  %v186_v40 = vld [vmem:[#allocation4 + $0x3f8] sm:$0xff]  ;;  %v579_v43 = vperm.slane %v1407_v5, 5 }
  0x80   :  { %890 = vmatpush.msrb.mxu2 %v527_v44  ;;  %914 = vmatpush.msrb.mxu3 %v551_v45  ;;  %v545_v58 = vld [vmem:[#allocation4 + $0xf30] sm:$0xff]  ;;  %v487_v3 = vld [vmem:[#allocation4 + $0xd60] sm:$0xff]  ;;  %v80_v44 = vld [vmem:[#allocation4 + $0xa8] sm:$0xff] }
  0x81   :  { %851 = vmatpush.msrb.mxu0 %v461_v46  ;;  %870 = vmatpush.msrb.mxu1 %v495_v47  ;;  %v489_v61 = vld [vmem:[#allocation4 + $0xd70] sm:$0xff]  ;;  %v451_v8 = vld [vmem:[#allocation4 + $0xc40] sm:$0xff]  ;;  %v120_v45 = vld [vmem:[#allocation4 + $0x1e8] sm:$0xff] }
  0x82   :  { %891 = vmatpush.msrb.mxu2 %v525_v48  ;;  %915 = vmatpush.msrb.mxu3 %v549_v49  ;;  %v453_v0 = vld [vmem:[#allocation4 + $0xc50] sm:$0xff]  ;;  %v515_v10 = vld [vmem:[#allocation4 + $0xe40] sm:$0xff]  ;;  %v154_v46 = vld [vmem:[#allocation4 + $0x2f8] sm:$0xff] }
  0x83   :  { %852 = vmatpush.msrb.mxu0 %v459_v50  ;;  %871 = vmatpush.msrb.mxu1 %v493_v51  ;;  %v517_v4 = vld [vmem:[#allocation4 + $0xe50] sm:$0xff]  ;;  %v539_v11 = vld [vmem:[#allocation4 + $0xf00] sm:$0xff]  ;;  %v184_v47 = vld [vmem:[#allocation4 + $0x3e8] sm:$0xff] }
  0x84   :  { %892 = vmatpush.msrb.mxu2 %v523_v53  ;;  %916 = vmatpush.msrb.mxu3 %v547_v54  ;;  %v541_v6 = vld [vmem:[#allocation4 + $0xf10] sm:$0xff]  ;;  %v483_v17 = vld [vmem:[#allocation4 + $0xd40] sm:$0xff]  ;;  %v78_v48 = vld [vmem:[#allocation4 + $0x98] sm:$0xff] }
  0x85   :  { %853 = vmatpush.msrb.mxu0 %v457_v55  ;;  %872 = vmatpush.msrb.mxu1 %v491_v56  ;;  %v485_v9 = vld [vmem:[#allocation4 + $0xd50] sm:$0xff]  ;;  %v447_v19 = vld [vmem:[#allocation4 + $0xc20] sm:$0xff]  ;;  %v118_v49 = vld [vmem:[#allocation4 + $0x1d8] sm:$0xff] }
  0x86   :  { %893 = vmatpush.msrb.mxu2 %v521_v57  ;;  %917 = vmatpush.msrb.mxu3 %v545_v58  ;;  %v449_v12 = vld [vmem:[#allocation4 + $0xc30] sm:$0xff]  ;;  %v511_v26 = vld [vmem:[#allocation4 + $0xe20] sm:$0xff]  ;;  %v152_v50 = vld [vmem:[#allocation4 + $0x2e8] sm:$0xff] }
  0x87   :  { %854 = vmatpush.msrb.mxu0 %v455_v60  ;;  %873 = vmatpush.msrb.mxu1 %v489_v61  ;;  %v513_v18 = vld [vmem:[#allocation4 + $0xe30] sm:$0xff]  ;;  %v479_v30 = vld [vmem:[#allocation4 + $0xd20] sm:$0xff]  ;;  %v182_v51 = vld [vmem:[#allocation4 + $0x3d8] sm:$0xff] }
  0x88   :  { %894 = vmatpush.msrb.mxu2 %v519_v62  ;;  %918 = vmatpush.msrb.mxu3 %v543_v63  ;;  %v481_v25 = vld [vmem:[#allocation4 + $0xd30] sm:$0xff]  ;;  %v443_v32 = vld [vmem:[#allocation4 + $0xc00] sm:$0xff]  ;;  %v76_v53 = vld [vmem:[#allocation4 + $0x88] sm:$0xff] }
  0x89   :  { %855 = vmatpush.msrb.mxu0 %v453_v0  ;;  %874 = vmatpush.msrb.mxu1 %v487_v3  ;;  %v445_v28 = vld [vmem:[#allocation4 + $0xc10] sm:$0xff]  ;;  %v507_v36 = vld [vmem:[#allocation4 + $0xe00] sm:$0xff]  ;;  %v116_v54 = vld [vmem:[#allocation4 + $0x1c8] sm:$0xff] }
  0x8a   :  { %895 = vmatpush.msrb.mxu2 %v517_v4  ;;  %919 = vmatpush.msrb.mxu3 %v541_v6  ;;  %v509_v31 = vld [vmem:[#allocation4 + $0xe10] sm:$0xff]  ;;  %v475_v42 = vld [vmem:[#allocation4 + $0xd00] sm:$0xff]  ;;  %v150_v55 = vld [vmem:[#allocation4 + $0x2d8] sm:$0xff] }
  0x8b   :  { %856 = vmatpush.msrb.mxu0 %v451_v8  ;;  %875 = vmatpush.msrb.mxu1 %v485_v9  ;;  %v477_v34 = vld [vmem:[#allocation4 + $0xd10] sm:$0xff]  ;;  %v180_v56 = vld [vmem:[#allocation4 + $0x3c8] sm:$0xff]  ;;  %v74_v57 = vld [vmem:[#allocation4 + $0x78] sm:$0xff] }
  0x8c   :  { %896 = vmatpush.msrb.mxu2 %v515_v10  ;;  %920 = vmatpush.msrb.mxu3 %v539_v11  ;;  %v114_v58 = vld [vmem:[#allocation4 + $0x1b8] sm:$0xff]  ;;  %v148_v60 = vld [vmem:[#allocation4 + $0x2c8] sm:$0xff] }
  0x8d   :  { %857 = vmatpush.msrb.mxu0 %v449_v12  ;;  %876 = vmatpush.msrb.mxu1 %v483_v17  ;;  %v178_v61 = vld [vmem:[#allocation4 + $0x3b8] sm:$0xff]  ;;  %v72_v62 = vld [vmem:[#allocation4 + $0x68] sm:$0xff] }
  0x8e   :  { %925 = vmatpush.msra.mxu3 %v90_v14  ;;  %897 = vmatpush.msrb.mxu2 %v513_v18  ;;  %v112_v63 = vld [vmem:[#allocation4 + $0x1a8] sm:$0xff]  ;;  %v146_v0 = vld [vmem:[#allocation4 + $0x2b8] sm:$0xff] }
  0x8f   :  { %858 = vmatpush.msrb.mxu0 %v447_v19  ;;  %877 = vmatpush.msrb.mxu1 %v481_v25  ;;  %v176_v3 = vld [vmem:[#allocation4 + $0x3a8] sm:$0xff]  ;;  %v70_v4 = vld [vmem:[#allocation4 + $0x58] sm:$0xff] }
  0x90   :  { %926 = vmatpush.msra.mxu3 %v88_v23  ;;  %898 = vmatpush.msrb.mxu2 %v511_v26  ;;  %v110_v6 = vld [vmem:[#allocation4 + $0x198] sm:$0xff]  ;;  %v144_v8 = vld [vmem:[#allocation4 + $0x2a8] sm:$0xff] }
  0x91   :  { %859 = vmatpush.msrb.mxu0 %v445_v28  ;;  %878 = vmatpush.msrb.mxu1 %v479_v30  ;;  %v174_v9 = vld [vmem:[#allocation4 + $0x398] sm:$0xff]  ;;  %v68_v10 = vld [vmem:[#allocation4 + $0x48] sm:$0xff] }
  0x92   :  { %927 = vmatpush.msra.mxu3 %v86_v29  ;;  %899 = vmatpush.msrb.mxu2 %v509_v31  ;;  %v108_v11 = vld [vmem:[#allocation4 + $0x188] sm:$0xff]  ;;  %v142_v12 = vld [vmem:[#allocation4 + $0x298] sm:$0xff] }
  0x93   :  { %860 = vmatpush.msrb.mxu0 %v443_v32  ;;  %879 = vmatpush.msrb.mxu1 %v477_v34  ;;  %v172_v14 = vld [vmem:[#allocation4 + $0x388] sm:$0xff]  ;;  %v66_v17 = vld [vmem:[#allocation4 + $0x38] sm:$0xff] }
  0x94   :  { %928 = vmatpush.msra.mxu3 %v84_v33  ;;  %900 = vmatpush.msrb.mxu2 %v507_v36  ;;  %v106_v18 = vld [vmem:[#allocation4 + $0x178] sm:$0xff]  ;;  %v140_v19 = vld [vmem:[#allocation4 + $0x288] sm:$0xff] }
  0x95   :  { %861 = vmatmul.f32.vlgmr.msrb.gmra.mxu0 %v578_v35  ;;  %901 = vmatmul.f32.vlgmr.msrb.gmra.mxu2 %v580_v37  ;;  %v170_v23 = vld [vmem:[#allocation4 + $0x378] sm:$0xff]  ;;  %v64_v25 = vld [vmem:[#allocation4 + $0x28] sm:$0xff] }
  0x96   :  { %929 = vmatpush.msra.mxu3 %v82_v38  ;;  %945 = vmatpush.msra.mxu0 %v122_v39  ;;  %v104_v26 = vld [vmem:[#allocation4 + $0x168] sm:$0xff]  ;;  %v138_v28 = vld [vmem:[#allocation4 + $0x278] sm:$0xff] }
  0x97   :  { %985 = vmatpush.msra.mxu2 %v186_v40  ;;  %880 = vmatpush.msrb.mxu1 %v475_v42  ;;  %v168_v29 = vld [vmem:[#allocation4 + $0x368] sm:$0xff]  ;;  %v62_v30 = vld [vmem:[#allocation4 + $0x18] sm:$0xff] }
  0x98   :  { %1264 = vmatmul.msk.f32.vlgmr.msrb.gmra.mxu3 %vm602_vm0, %v581_v41  ;;  %881 = vmatmul.f32.vlgmr.msrb.gmra.mxu1 %v579_v43  ;;  %v102_v31 = vld [vmem:[#allocation4 + $0x158] sm:$0xff]  ;;  %v136_v32 = vld [vmem:[#allocation4 + $0x268] sm:$0xff] }
  0x99   :  { %930 = vmatpush.msra.mxu3 %v80_v44  ;;  %946 = vmatpush.msra.mxu0 %v120_v45  ;;  %v166_v33 = vld [vmem:[#allocation4 + $0x358] sm:$0xff]  ;;  %v60_v34 = vld [vmem:[#allocation4 + $0x8] sm:$0xff] }
  0x9a   :  { %965 = vmatpush.msra.mxu1 %v154_v46  ;;  %986 = vmatpush.msra.mxu2 %v184_v47  ;;  %v100_v36 = vld [vmem:[#allocation4 + $0x148] sm:$0xff]  ;;  %v134_v38 = vld [vmem:[#allocation4 + $0x258] sm:$0xff] }
  0x9b   :  { %931 = vmatpush.msra.mxu3 %v78_v48  ;;  %947 = vmatpush.msra.mxu0 %v118_v49  ;;  %v164_v39 = vld [vmem:[#allocation4 + $0x348] sm:$0xff]  ;;  %v218_v40 = vld [vmem:[#allocation4 + $0x4f8] sm:$0xff] }
  0x9c   :  { %966 = vmatpush.msra.mxu1 %v152_v50  ;;  %987 = vmatpush.msra.mxu2 %v182_v51  ;;  %v98_v42 = vld [vmem:[#allocation4 + $0x138] sm:$0xff]  ;;  %v132_v44 = vld [vmem:[#allocation4 + $0x248] sm:$0xff] }
  0x9d   :  { %932 = vmatpush.msra.mxu3 %v76_v53  ;;  %948 = vmatpush.msra.mxu0 %v116_v54  ;;  %v162_v45 = vld [vmem:[#allocation4 + $0x338] sm:$0xff]  ;;  %v216_v46 = vld [vmem:[#allocation4 + $0x4e8] sm:$0xff] }
  0x9e   :  { %967 = vmatpush.msra.mxu1 %v150_v55  ;;  %988 = vmatpush.msra.mxu2 %v180_v56  ;;  %v96_v47 = vld [vmem:[#allocation4 + $0x128] sm:$0xff]  ;;  %v130_v48 = vld [vmem:[#allocation4 + $0x238] sm:$0xff] }
  0x9f   :  { %933 = vmatpush.msra.mxu3 %v74_v57  ;;  %949 = vmatpush.msra.mxu0 %v114_v58  ;;  %v160_v49 = vld [vmem:[#allocation4 + $0x328] sm:$0xff]  ;;  %v214_v50 = vld [vmem:[#allocation4 + $0x4d8] sm:$0xff] }
  0xa0   :  { %968 = vmatpush.msra.mxu1 %v148_v60  ;;  %989 = vmatpush.msra.mxu2 %v178_v61  ;;  %v94_v51 = vld [vmem:[#allocation4 + $0x118] sm:$0xff]  ;;  %v128_v53 = vld [vmem:[#allocation4 + $0x228] sm:$0xff] }
  0xa1   :  { %934 = vmatpush.msra.mxu3 %v72_v62  ;;  %950 = vmatpush.msra.mxu0 %v112_v63  ;;  %v158_v54 = vld [vmem:[#allocation4 + $0x318] sm:$0xff]  ;;  %v212_v55 = vld [vmem:[#allocation4 + $0x4c8] sm:$0xff] }
  0xa2   :  { %969 = vmatpush.msra.mxu1 %v146_v0  ;;  %990 = vmatpush.msra.mxu2 %v176_v3  ;;  %v92_v56 = vld [vmem:[#allocation4 + $0x108] sm:$0xff]  ;;  %v126_v57 = vld [vmem:[#allocation4 + $0x218] sm:$0xff] }
  0xa3   :  { %935 = vmatpush.msra.mxu3 %v70_v4  ;;  %951 = vmatpush.msra.mxu0 %v110_v6  ;;  %v156_v58 = vld [vmem:[#allocation4 + $0x308] sm:$0xff]  ;;  %v210_v60 = vld [vmem:[#allocation4 + $0x4b8] sm:$0xff] }
  0xa4   :  { %970 = vmatpush.msra.mxu1 %v144_v8  ;;  %991 = vmatpush.msra.mxu2 %v174_v9  ;;  %v250_v61 = vld [vmem:[#allocation4 + $0x5f8] sm:$0xff]  ;;  %v124_v63 = vld [vmem:[#allocation4 + $0x208] sm:$0xff] }
  0xa5   :  { %936 = vmatpush.msra.mxu3 %v68_v10  ;;  %952 = vmatpush.msra.mxu0 %v108_v11  ;;  %v314_v62 = vld [vmem:[#allocation4 + $0x7f8] sm:$0xff]  ;;  %v208_v0 = vld [vmem:[#allocation4 + $0x4a8] sm:$0xff] }
  0xa6   :  { %971 = vmatpush.msra.mxu1 %v142_v12  ;;  %992 = vmatpush.msra.mxu2 %v172_v14  ;;  %v248_v3 = vld [vmem:[#allocation4 + $0x5e8] sm:$0xff]  ;;  %v282_v4 = vld [vmem:[#allocation4 + $0x6f8] sm:$0xff] }
  0xa7   :  { %937 = vmatpush.msra.mxu3 %v66_v17  ;;  %953 = vmatpush.msra.mxu0 %v106_v18  ;;  %v312_v6 = vld [vmem:[#allocation4 + $0x7e8] sm:$0xff]  ;;  %v206_v8 = vld [vmem:[#allocation4 + $0x498] sm:$0xff] }
  0xa8   :  { %972 = vmatpush.msra.mxu1 %v140_v19  ;;  %993 = vmatpush.msra.mxu2 %v170_v23  ;;  %v246_v9 = vld [vmem:[#allocation4 + $0x5d8] sm:$0xff]  ;;  %v280_v10 = vld [vmem:[#allocation4 + $0x6e8] sm:$0xff] }
  0xa9   :  { %938 = vmatpush.msra.mxu3 %v64_v25  ;;  %954 = vmatpush.msra.mxu0 %v104_v26  ;;  %v310_v11 = vld [vmem:[#allocation4 + $0x7d8] sm:$0xff]  ;;  %v204_v12 = vld [vmem:[#allocation4 + $0x488] sm:$0xff] }
  0xaa   :  { %973 = vmatpush.msra.mxu1 %v138_v28  ;;  %994 = vmatpush.msra.mxu2 %v168_v29  ;;  %v244_v14 = vld [vmem:[#allocation4 + $0x5c8] sm:$0xff]  ;;  %v278_v17 = vld [vmem:[#allocation4 + $0x6d8] sm:$0xff] }
  0xab   :  { %939 = vmatpush.msra.mxu3 %v62_v30  ;;  %955 = vmatpush.msra.mxu0 %v102_v31  ;;  %v308_v18 = vld [vmem:[#allocation4 + $0x7c8] sm:$0xff]  ;;  %v202_v19 = vld [vmem:[#allocation4 + $0x478] sm:$0xff] }
  0xac   :  { %974 = vmatpush.msra.mxu1 %v136_v32  ;;  %995 = vmatpush.msra.mxu2 %v166_v33  ;;  %v242_v23 = vld [vmem:[#allocation4 + $0x5b8] sm:$0xff]  ;;  %v276_v25 = vld [vmem:[#allocation4 + $0x6c8] sm:$0xff] }
  0xad   :  { %940 = vmatpush.msra.mxu3 %v60_v34  ;;  %956 = vmatpush.msra.mxu0 %v100_v36  ;;  %v306_v26 = vld [vmem:[#allocation4 + $0x7b8] sm:$0xff]  ;;  %v200_v28 = vld [vmem:[#allocation4 + $0x468] sm:$0xff] }
  0xae   :  { %975 = vmatpush.msra.mxu1 %v134_v38  ;;  %996 = vmatpush.msra.mxu2 %v164_v39  ;;  %v240_v29 = vld [vmem:[#allocation4 + $0x5a8] sm:$0xff]  ;;  %v274_v30 = vld [vmem:[#allocation4 + $0x6b8] sm:$0xff] }
  0xaf   :  { %1005 = vmatpush.msrb.mxu3 %v218_v40  ;;  %957 = vmatpush.msra.mxu0 %v98_v42  ;;  %v304_v31 = vld [vmem:[#allocation4 + $0x7a8] sm:$0xff]  ;;  %v198_v32 = vld [vmem:[#allocation4 + $0x458] sm:$0xff] }
  0xb0   :  { %976 = vmatpush.msra.mxu1 %v132_v44  ;;  %997 = vmatpush.msra.mxu2 %v162_v45  ;;  %v238_v33 = vld [vmem:[#allocation4 + $0x598] sm:$0xff]  ;;  %v272_v34 = vld [vmem:[#allocation4 + $0x6a8] sm:$0xff] }
  0xb1   :  { %1006 = vmatpush.msrb.mxu3 %v216_v46  ;;  %958 = vmatpush.msra.mxu0 %v96_v47  ;;  %v302_v36 = vld [vmem:[#allocation4 + $0x798] sm:$0xff]  ;;  %v196_v38 = vld [vmem:[#allocation4 + $0x448] sm:$0xff] }
  0xb2   :  { %977 = vmatpush.msra.mxu1 %v130_v48  ;;  %998 = vmatpush.msra.mxu2 %v160_v49  ;;  %v236_v39 = vld [vmem:[#allocation4 + $0x588] sm:$0xff]  ;;  %v270_v40 = vld [vmem:[#allocation4 + $0x698] sm:$0xff] }
  0xb3   :  { %1007 = vmatpush.msrb.mxu3 %v214_v50  ;;  %959 = vmatpush.msra.mxu0 %v94_v51  ;;  %v300_v42 = vld [vmem:[#allocation4 + $0x788] sm:$0xff]  ;;  %v194_v44 = vld [vmem:[#allocation4 + $0x438] sm:$0xff] }
  0xb4   :  { %978 = vmatpush.msra.mxu1 %v128_v53  ;;  %999 = vmatpush.msra.mxu2 %v158_v54  ;;  %v234_v45 = vld [vmem:[#allocation4 + $0x578] sm:$0xff]  ;;  %v268_v46 = vld [vmem:[#allocation4 + $0x688] sm:$0xff] }
  0xb5   :  { %1008 = vmatpush.msrb.mxu3 %v212_v55  ;;  %960 = vmatpush.msra.mxu0 %v92_v56  ;;  %v298_v47 = vld [vmem:[#allocation4 + $0x778] sm:$0xff]  ;;  %v192_v48 = vld [vmem:[#allocation4 + $0x428] sm:$0xff] }
  0xb6   :  { %979 = vmatpush.msra.mxu1 %v126_v57  ;;  %1000 = vmatpush.msra.mxu2 %v156_v58  ;;  %v232_v49 = vld [vmem:[#allocation4 + $0x568] sm:$0xff]  ;;  %v266_v50 = vld [vmem:[#allocation4 + $0x678] sm:$0xff] }
  0xb7   :  { %1009 = vmatpush.msrb.mxu3 %v210_v60  ;;  %1025 = vmatpush.msrb.mxu0 %v250_v61  ;;  %v296_v51 = vld [vmem:[#allocation4 + $0x768] sm:$0xff]  ;;  %v190_v53 = vld [vmem:[#allocation4 + $0x418] sm:$0xff] }
  0xb8   :  { %1065 = vmatpush.msrb.mxu2 %v314_v62  ;;  %980 = vmatpush.msra.mxu1 %v124_v63  ;;  %v230_v54 = vld [vmem:[#allocation4 + $0x558] sm:$0xff]  ;;  %v264_v55 = vld [vmem:[#allocation4 + $0x668] sm:$0xff] }
  0xb9   :  { %1010 = vmatpush.msrb.mxu3 %v208_v0  ;;  %1026 = vmatpush.msrb.mxu0 %v248_v3  ;;  %v294_v56 = vld [vmem:[#allocation4 + $0x758] sm:$0xff]  ;;  %v188_v57 = vld [vmem:[#allocation4 + $0x408] sm:$0xff] }
  0xba   :  { %1045 = vmatpush.msrb.mxu1 %v282_v4  ;;  %1066 = vmatpush.msrb.mxu2 %v312_v6  ;;  %v228_v58 = vld [vmem:[#allocation4 + $0x548] sm:$0xff]  ;;  %v262_v60 = vld [vmem:[#allocation4 + $0x658] sm:$0xff] }
  0xbb   :  { %1011 = vmatpush.msrb.mxu3 %v206_v8  ;;  %1027 = vmatpush.msrb.mxu0 %v246_v9  ;;  %v292_v61 = vld [vmem:[#allocation4 + $0x748] sm:$0xff]  ;;  %v346_v62 = vld [vmem:[#allocation4 + $0x8f8] sm:$0xff] }
  0xbc   :  { %1046 = vmatpush.msrb.mxu1 %v280_v10  ;;  %1067 = vmatpush.msrb.mxu2 %v310_v11  ;;  %v226_v63 = vld [vmem:[#allocation4 + $0x538] sm:$0xff]  ;;  %v260_v0 = vld [vmem:[#allocation4 + $0x648] sm:$0xff] }
  0xbd   :  { %1012 = vmatpush.msrb.mxu3 %v204_v12  ;;  %1028 = vmatpush.msrb.mxu0 %v244_v14  ;;  %v290_v3 = vld [vmem:[#allocation4 + $0x738] sm:$0xff]  ;;  %v344_v4 = vld [vmem:[#allocation4 + $0x8e8] sm:$0xff] }
  0xbe   :  { %1047 = vmatpush.msrb.mxu1 %v278_v17  ;;  %1068 = vmatpush.msrb.mxu2 %v308_v18  ;;  %v224_v6 = vld [vmem:[#allocation4 + $0x528] sm:$0xff]  ;;  %v258_v8 = vld [vmem:[#allocation4 + $0x638] sm:$0xff] }
  0xbf   :  { %1013 = vmatpush.msrb.mxu3 %v202_v19  ;;  %1029 = vmatpush.msrb.mxu0 %v242_v23  ;;  %v288_v9 = vld [vmem:[#allocation4 + $0x728] sm:$0xff]  ;;  %v342_v10 = vld [vmem:[#allocation4 + $0x8d8] sm:$0xff] }
  0xc0   :  { %1048 = vmatpush.msrb.mxu1 %v276_v25  ;;  %1069 = vmatpush.msrb.mxu2 %v306_v26  ;;  %v222_v11 = vld [vmem:[#allocation4 + $0x518] sm:$0xff]  ;;  %v256_v12 = vld [vmem:[#allocation4 + $0x628] sm:$0xff] }
  0xc1   :  { %1014 = vmatpush.msrb.mxu3 %v200_v28  ;;  %1030 = vmatpush.msrb.mxu0 %v240_v29  ;;  %v286_v14 = vld [vmem:[#allocation4 + $0x718] sm:$0xff]  ;;  %v340_v17 = vld [vmem:[#allocation4 + $0x8c8] sm:$0xff] }
  0xc2   :  { %1049 = vmatpush.msrb.mxu1 %v274_v30  ;;  %1070 = vmatpush.msrb.mxu2 %v304_v31  ;;  %v254_v18 = vld [vmem:[#allocation4 + $0x618] sm:$0xff]  ;;  %v284_v19 = vld [vmem:[#allocation4 + $0x708] sm:$0xff] }
  0xc3   :  { %1015 = vmatpush.msrb.mxu3 %v198_v32  ;;  %1031 = vmatpush.msrb.mxu0 %v238_v33  ;;  %v378_v23 = vld [vmem:[#allocation4 + $0x9f8] sm:$0xff]  ;;  %v252_v28 = vld [vmem:[#allocation4 + $0x608] sm:$0xff] }
  0xc4   :  { %1050 = vmatpush.msrb.mxu1 %v272_v34  ;;  %1071 = vmatpush.msrb.mxu2 %v302_v36  ;;  %v338_v25 = vld [vmem:[#allocation4 + $0x8b8] sm:$0xff]  ;;  %v376_v29 = vld [vmem:[#allocation4 + $0x9e8] sm:$0xff] }
  0xc5   :  { %1016 = vmatpush.msrb.mxu3 %v196_v38  ;;  %1032 = vmatpush.msrb.mxu0 %v236_v39  ;;  %v442_v26 = vld [vmem:[#allocation4 + $0xbf8] sm:$0xff]  ;;  %v336_v30 = vld [vmem:[#allocation4 + $0x8a8] sm:$0xff] }
  0xc6   :  { %1051 = vmatpush.msrb.mxu1 %v270_v40  ;;  %1072 = vmatpush.msrb.mxu2 %v300_v42  ;;  %v440_v31 = vld [vmem:[#allocation4 + $0xbe8] sm:$0xff]  ;;  %v334_v32 = vld [vmem:[#allocation4 + $0x898] sm:$0xff] }
  0xc7   :  { %1017 = vmatpush.msrb.mxu3 %v194_v44  ;;  %1033 = vmatpush.msrb.mxu0 %v234_v45  ;;  %v374_v33 = vld [vmem:[#allocation4 + $0x9d8] sm:$0xff]  ;;  %v332_v36 = vld [vmem:[#allocation4 + $0x888] sm:$0xff] }
  0xc8   :  { %1052 = vmatpush.msrb.mxu1 %v268_v46  ;;  %1073 = vmatpush.msrb.mxu2 %v298_v47  ;;  %v438_v34 = vld [vmem:[#allocation4 + $0xbd8] sm:$0xff]  ;;  %v436_v39 = vld [vmem:[#allocation4 + $0xbc8] sm:$0xff] }
  0xc9   :  { %1018 = vmatpush.msrb.mxu3 %v192_v48  ;;  %1034 = vmatpush.msrb.mxu0 %v232_v49  ;;  %v406_v38 = vld [vmem:[#allocation4 + $0xad8] sm:$0xff]  ;;  %v328_v45 = vld [vmem:[#allocation4 + $0x868] sm:$0xff] }
  0xca   :  { %1053 = vmatpush.msrb.mxu1 %v266_v50  ;;  %1074 = vmatpush.msrb.mxu2 %v296_v51  ;;  %v330_v40 = vld [vmem:[#allocation4 + $0x878] sm:$0xff]  ;;  %v368_v46 = vld [vmem:[#allocation4 + $0x9a8] sm:$0xff] }
  0xcb   :  { %1019 = vmatpush.msrb.mxu3 %v190_v53  ;;  %1035 = vmatpush.msrb.mxu0 %v230_v54  ;;  %v370_v42 = vld [vmem:[#allocation4 + $0x9b8] sm:$0xff]  ;;  %v432_v48 = vld [vmem:[#allocation4 + $0xba8] sm:$0xff] }
  0xcc   :  { %1054 = vmatpush.msrb.mxu1 %v264_v55  ;;  %1075 = vmatpush.msrb.mxu2 %v294_v56  ;;  %v434_v44 = vld [vmem:[#allocation4 + $0xbb8] sm:$0xff]  ;;  %v400_v50 = vld [vmem:[#allocation4 + $0xaa8] sm:$0xff] }
  0xcd   :  { %1020 = vmatpush.msrb.mxu3 %v188_v57  ;;  %1036 = vmatpush.msrb.mxu0 %v228_v58  ;;  %v402_v47 = vld [vmem:[#allocation4 + $0xab8] sm:$0xff]  ;;  %v324_v53 = vld [vmem:[#allocation4 + $0x848] sm:$0xff] }
  0xce   :  { %1055 = vmatpush.msrb.mxu1 %v262_v60  ;;  %1076 = vmatpush.msrb.mxu2 %v292_v61  ;;  %v366_v49 = vld [vmem:[#allocation4 + $0x998] sm:$0xff]  ;;  %v428_v55 = vld [vmem:[#allocation4 + $0xb88] sm:$0xff] }
  0xcf   :  { %941 = vmatmul.f32.vlgmr.msra.gmra.mxu3 %v566_v1  ;;  %1037 = vmatpush.msrb.mxu0 %v226_v63  ;;  %v220_v1 = vld [vmem:[#allocation4 + $0x508] sm:$0xff]  ;;  %v430_v51 = vld [vmem:[#allocation4 + $0xb98] sm:$0xff] }
  0xd0   :  { %1085 = vmatpush.msra.mxu3 %v346_v62  ;;  %1056 = vmatpush.msrb.mxu1 %v260_v0  ;;  %v398_v54 = vld [vmem:[#allocation4 + $0xa98] sm:$0xff]  ;;  %v320_v58 = vld [vmem:[#allocation4 + $0x828] sm:$0xff] }
  0xd1   :  { %1077 = vmatpush.msrb.mxu2 %v290_v3  ;;  %1038 = vmatpush.msrb.mxu0 %v224_v6  ;;  %v322_v56 = vld [vmem:[#allocation4 + $0x838] sm:$0xff]  ;;  %v360_v60 = vld [vmem:[#allocation4 + $0x968] sm:$0xff] }
  0xd2   :  { %1086 = vmatpush.msra.mxu3 %v344_v4  ;;  %1057 = vmatpush.msrb.mxu1 %v258_v8  ;;  %v362_v57 = vld [vmem:[#allocation4 + $0x978] sm:$0xff]  ;;  %v424_v62 = vld [vmem:[#allocation4 + $0xb68] sm:$0xff] }
  0xd3   :  { %1078 = vmatpush.msrb.mxu2 %v288_v9  ;;  %1039 = vmatpush.msrb.mxu0 %v222_v11  ;;  %v394_v61 = vld [vmem:[#allocation4 + $0xa78] sm:$0xff]  ;;  %v392_v3 = vld [vmem:[#allocation4 + $0xa68] sm:$0xff] }
  0xd4   :  { %1087 = vmatpush.msra.mxu3 %v342_v10  ;;  %1058 = vmatpush.msrb.mxu1 %v256_v12  ;;  %v318_v63 = vld [vmem:[#allocation4 + $0x818] sm:$0xff]  ;;  %v316_v6 = vld [vmem:[#allocation4 + $0x808] sm:$0xff] }
  0xd5   :  { %1079 = vmatpush.msrb.mxu2 %v286_v14  ;;  %1040 = vmatpush.msrb.mxu0 %v220_v1  ;;  %v358_v0 = vld [vmem:[#allocation4 + $0x958] sm:$0xff]  ;;  %v356_v8 = vld [vmem:[#allocation4 + $0x948] sm:$0xff] }
  0xd6   :  { %1001 = vmatmul.f32.vlgmr.msra.gmra.mxu2 %v569_v2  ;;  %1088 = vmatpush.msra.mxu3 %v340_v17  ;;  %v410_v2 = vld [vmem:[#allocation4 + $0xaf8] sm:$0xff]  ;;  %v420_v10 = vld [vmem:[#allocation4 + $0xb48] sm:$0xff] }
  0xd7   :  { %1059 = vmatpush.msrb.mxu1 %v254_v18  ;;  %1080 = vmatpush.msrb.mxu2 %v284_v19  ;;  %v422_v4 = vld [vmem:[#allocation4 + $0xb58] sm:$0xff]  ;;  %v388_v14 = vld [vmem:[#allocation4 + $0xa48] sm:$0xff] }
  0xd8   :  { %961 = vmatmul.f32.vlgmr.msra.gmra.mxu0 %v567_v7  ;;  %1021 = vmatmul.f32.vlgmr.msrb.gmra.mxu3 %v570_v21  ;;  %v408_v7 = vld [vmem:[#allocation4 + $0xae8] sm:$0xff]  ;;  %v390_v9 = vld [vmem:[#allocation4 + $0xa58] sm:$0xff] }
  0xd9   :  { %1105 = vmatpush.msra.mxu0 %v378_v23  ;;  %1089 = vmatpush.msra.mxu3 %v338_v25  ;;  %v372_v21 = vld [vmem:[#allocation4 + $0x9c8] sm:$0xff]  ;;  %v474_v11 = vld [vmem:[#allocation4 + $0xcf8] sm:$0xff] }
  0xda   :  { %1145 = vmatpush.msra.mxu2 %v442_v26  ;;  %1060 = vmatpush.msrb.mxu1 %v252_v28  ;;  %v354_v12 = vld [vmem:[#allocation4 + $0x938] sm:$0xff]  ;;  %v472_v1 = vld [vmem:[#allocation4 + $0xce8] sm:$0xff] }
  0xdb   :  { %1106 = vmatpush.msra.mxu0 %v376_v29  ;;  %981 = vmatmul.f32.vlgmr.msra.gmra.mxu1 %v568_v59  ;;  %v404_v59 = vld [vmem:[#allocation4 + $0xac8] sm:$0xff]  ;;  %v418_v17 = vld [vmem:[#allocation4 + $0xb38] sm:$0xff] }
  0xdc   :  { %1090 = vmatpush.msra.mxu3 %v336_v30  ;;  %1125 = vmatpush.msra.mxu1 %v410_v2  ;;  %v352_v18 = vld [vmem:[#allocation4 + $0x928] sm:$0xff]  ;;  %v386_v19 = vld [vmem:[#allocation4 + $0xa38] sm:$0xff] }
  0xdd   :  { %1146 = vmatpush.msra.mxu2 %v440_v31  ;;  %1107 = vmatpush.msra.mxu0 %v374_v33  ;;  %v416_v23 = vld [vmem:[#allocation4 + $0xb28] sm:$0xff]  ;;  %v470_v25 = vld [vmem:[#allocation4 + $0xcd8] sm:$0xff] }
  0xde   :  { %1091 = vmatpush.msra.mxu3 %v334_v32  ;;  %1126 = vmatpush.msra.mxu1 %v408_v7  ;;  %v350_v26 = vld [vmem:[#allocation4 + $0x918] sm:$0xff]  ;;  %v384_v28 = vld [vmem:[#allocation4 + $0xa28] sm:$0xff] }
  0xdf   :  { %1147 = vmatpush.msra.mxu2 %v438_v34  ;;  %1108 = vmatpush.msra.mxu0 %v372_v21  ;;  %v414_v29 = vld [vmem:[#allocation4 + $0xb18] sm:$0xff]  ;;  %v468_v30 = vld [vmem:[#allocation4 + $0xcc8] sm:$0xff] }
  0xe0   :  { %1081 = vmatmul.f32.vlgmr.msrb.gmra.mxu2 %v573_v22  ;;  %1092 = vmatpush.msra.mxu3 %v332_v36  ;;  %v326_v22 = vld [vmem:[#allocation4 + $0x858] sm:$0xff]  ;;  %v348_v2 = vld [vmem:[#allocation4 + $0x908] sm:$0xff] }
  0xe1   :  { %1127 = vmatpush.msra.mxu1 %v406_v38  ;;  %1148 = vmatpush.msra.mxu2 %v436_v39  ;;  %v412_v31 = vld [vmem:[#allocation4 + $0xb08] sm:$0xff]  ;;  %v466_v32 = vld [vmem:[#allocation4 + $0xcb8] sm:$0xff] }
  0xe2   :  { %1041 = vmatmul.f32.vlgmr.msrb.gmra.mxu0 %v571_v27  ;;  %1093 = vmatpush.msra.mxu3 %v330_v40  ;;  %v364_v27 = vld [vmem:[#allocation4 + $0x988] sm:$0xff]  ;;  %v506_v33 = vld [vmem:[#allocation4 + $0xdf8] sm:$0xff] }
  0xe3   :  { %1109 = vmatpush.msra.mxu0 %v370_v42  ;;  %1128 = vmatpush.msra.mxu1 %v404_v59  ;;  %v380_v7 = vld [vmem:[#allocation4 + $0xa08] sm:$0xff]  ;;  %v562_v34 = vld [vmem:[#allocation4 + $0xfb8] sm:$0xff] }
  0xe4   :  { %1149 = vmatpush.msra.mxu2 %v434_v44  ;;  %1061 = vmatmul.f32.vlgmr.msrb.gmra.mxu1 %v572_v15  ;;  %v426_v15 = vld [vmem:[#allocation4 + $0xb78] sm:$0xff]  ;;  %v464_v36 = vld [vmem:[#allocation4 + $0xca8] sm:$0xff] }
  0xe5   :  { %1094 = vmatpush.msra.mxu3 %v328_v45  ;;  %1110 = vmatpush.msra.mxu0 %v368_v46  ;;  %v504_v21 = vld [vmem:[#allocation4 + $0xde8] sm:$0xff]  ;;  %v538_v38 = vld [vmem:[#allocation4 + $0xef8] sm:$0xff] }
  0xe6   :  { %1129 = vmatpush.msra.mxu1 %v402_v47  ;;  %1150 = vmatpush.msra.mxu2 %v432_v48  ;;  %v462_v39 = vld [vmem:[#allocation4 + $0xc98] sm:$0xff]  ;;  %v560_v40 = vld [vmem:[#allocation4 + $0xfa8] sm:$0xff] }
  0xe7   :  { %1095 = vmatpush.msra.mxu3 %v326_v22  ;;  %1111 = vmatpush.msra.mxu0 %v366_v49  ;;  %v502_v42 = vld [vmem:[#allocation4 + $0xdd8] sm:$0xff]  ;;  %v536_v59 = vld [vmem:[#allocation4 + $0xee8] sm:$0xff] }
  0xe8   :  { %1130 = vmatpush.msra.mxu1 %v400_v50  ;;  %1151 = vmatpush.msra.mxu2 %v430_v51  ;;  %v558_v44 = vld [vmem:[#allocation4 + $0xf98] sm:$0xff]  ;;  %v556_v47 = vld [vmem:[#allocation4 + $0xf88] sm:$0xff] }
  0xe9   :  { %1096 = vmatpush.msra.mxu3 %v324_v53  ;;  %1112 = vmatpush.msra.mxu0 %v364_v27  ;;  %v534_v45 = vld [vmem:[#allocation4 + $0xed8] sm:$0xff]  ;;  %v532_v22 = vld [vmem:[#allocation4 + $0xec8] sm:$0xff] }
  0xea   :  { %1131 = vmatpush.msra.mxu1 %v398_v54  ;;  %1152 = vmatpush.msra.mxu2 %v428_v55  ;;  %v458_v46 = vld [vmem:[#allocation4 + $0xc78] sm:$0xff]  ;;  %v496_v50 = vld [vmem:[#allocation4 + $0xda8] sm:$0xff] }
  0xeb   :  { %1097 = vmatpush.msra.mxu3 %v322_v56  ;;  %1113 = vmatpush.msra.mxu0 %v362_v57  ;;  %v498_v48 = vld [vmem:[#allocation4 + $0xdb8] sm:$0xff]  ;;  %v552_v27 = vld [vmem:[#allocation4 + $0xf68] sm:$0xff] }
  0xec   :  { %1132 = vmatpush.msra.mxu1 %v396_v52  ;;  %1153 = vmatpush.msra.mxu2 %v426_v15  ;;  %v554_v49 = vld [vmem:[#allocation4 + $0xf78] sm:$0xff]  ;;  %v528_v55 = vld [vmem:[#allocation4 + $0xea8] sm:$0xff] }
  0xed   :  { %1098 = vmatpush.msra.mxu3 %v320_v58  ;;  %1114 = vmatpush.msra.mxu0 %v360_v60  ;;  %v530_v51 = vld [vmem:[#allocation4 + $0xeb8] sm:$0xff]  ;;  %v452_v56 = vld [vmem:[#allocation4 + $0xc48] sm:$0xff] }
  0xee   :  { %1133 = vmatpush.msra.mxu1 %v394_v61  ;;  %1154 = vmatpush.msra.mxu2 %v424_v62  ;;  %v454_v53 = vld [vmem:[#allocation4 + $0xc58] sm:$0xff]  ;;  %v492_v52 = vld [vmem:[#allocation4 + $0xd88] sm:$0xff] }
  0xef   :  { %1099 = vmatpush.msra.mxu3 %v318_v63  ;;  %1115 = vmatpush.msra.mxu0 %v358_v0  ;;  %v494_v54 = vld [vmem:[#allocation4 + $0xd98] sm:$0xff]  ;;  %v548_v60 = vld [vmem:[#allocation4 + $0xf48] sm:$0xff] }
  0xf0   :  { %1134 = vmatpush.msra.mxu1 %v392_v3  ;;  %1155 = vmatpush.msra.mxu2 %v422_v4  ;;  %v550_v57 = vld [vmem:[#allocation4 + $0xf58] sm:$0xff]  ;;  %v524_v62 = vld [vmem:[#allocation4 + $0xe88] sm:$0xff] }
  0xf1   :  { %1100 = vmatpush.msra.mxu3 %v316_v6  ;;  %1116 = vmatpush.msra.mxu0 %v356_v8  ;;  %v526_v15 = vld [vmem:[#allocation4 + $0xe98] sm:$0xff]  ;;  %v448_v63 = vld [vmem:[#allocation4 + $0xc28] sm:$0xff] }
  0xf2   :  { %1135 = vmatpush.msra.mxu1 %v390_v9  ;;  %1156 = vmatpush.msra.mxu2 %v420_v10  ;;  %v450_v58 = vld [vmem:[#allocation4 + $0xc38] sm:$0xff]  ;;  %v488_v3 = vld [vmem:[#allocation4 + $0xd68] sm:$0xff] }
  0xf3   :  { %1101 = vmatmul.f32.vlgmr.msra.gmra.mxu3 %v574_v13  ;;  %1117 = vmatpush.msra.mxu0 %v354_v12  ;;  %v382_v13 = vld [vmem:[#allocation4 + $0xa18] sm:$0xff]  ;;  %v544_v8 = vld [vmem:[#allocation4 + $0xf28] sm:$0xff] }
  0xf4   :  { %1165 = vmatpush.msrb.mxu3 %v474_v11  ;;  %1136 = vmatpush.msra.mxu1 %v388_v14  ;;  %v490_v61 = vld [vmem:[#allocation4 + $0xd78] sm:$0xff]  ;;  %v520_v10 = vld [vmem:[#allocation4 + $0xe68] sm:$0xff] }
  0xf5   :  { %1157 = vmatpush.msra.mxu2 %v418_v17  ;;  %1118 = vmatpush.msra.mxu0 %v352_v18  ;;  %v546_v0 = vld [vmem:[#allocation4 + $0xf38] sm:$0xff]  ;;  %v444_v11 = vld [vmem:[#allocation4 + $0xc08] sm:$0xff] }
  0xf6   :  { %1166 = vmatpush.msrb.mxu3 %v472_v1  ;;  %1137 = vmatpush.msra.mxu1 %v386_v19  ;;  %v522_v4 = vld [vmem:[#allocation4 + $0xe78] sm:$0xff]  ;;  %v484_v14 = vld [vmem:[#allocation4 + $0xd48] sm:$0xff] }
  0xf7   :  { %1158 = vmatpush.msra.mxu2 %v416_v23  ;;  %1119 = vmatpush.msra.mxu0 %v350_v26  ;;  %v446_v6 = vld [vmem:[#allocation4 + $0xc18] sm:$0xff]  ;;  %v540_v1 = vld [vmem:[#allocation4 + $0xf08] sm:$0xff] }
  0xf8   :  { %1167 = vmatpush.msrb.mxu3 %v470_v25  ;;  %1138 = vmatpush.msra.mxu1 %v384_v28  ;;  %v486_v9 = vld [vmem:[#allocation4 + $0xd58] sm:$0xff]  ;;  %v516_v19 = vld [vmem:[#allocation4 + $0xe48] sm:$0xff] }
  0xf9   :  { %1159 = vmatpush.msra.mxu2 %v414_v29  ;;  %1120 = vmatpush.msra.mxu0 %v348_v2  ;;  %v542_v12 = vld [vmem:[#allocation4 + $0xf18] sm:$0xff]  ;;  %v480_v23 = vld [vmem:[#allocation4 + $0xd28] sm:$0xff] }
  0xfa   :  { %1168 = vmatpush.msrb.mxu3 %v468_v30  ;;  %1139 = vmatpush.msra.mxu1 %v382_v13  ;;  %v518_v17 = vld [vmem:[#allocation4 + $0xe58] sm:$0xff]  ;;  %v512_v28 = vld [vmem:[#allocation4 + $0xe28] sm:$0xff]  ;;  %v622_v13 = vpop.f32.mrf.mxu0 }
  0xfb   :  { %1160 = vmatpush.msra.mxu2 %v412_v31  ;;  %1121 = vmatmul.f32.vlgmr.msra.gmra.mxu0 %v575_v24  ;;  %v460_v24 = vld [vmem:[#allocation4 + $0xc88] sm:$0xff]  ;;  %v482_v18 = vld [vmem:[#allocation4 + $0xd38] sm:$0xff]  ;;  %v642_v31 = vpop.f32.mrf.mxu1 }
  0xfc   :  { %1161 = vmatmul.f32.vlgmr.msra.gmra.mxu2 %v577_v20  ;;  %1169 = vmatpush.msrb.mxu3 %v466_v32  ;;  %v500_v20 = vld [vmem:[#allocation4 + $0xdc8] sm:$0xff]  ;;  %v514_v25 = vld [vmem:[#allocation4 + $0xe38] sm:$0xff]  ;;  %v662_v32 = vpop.f32.mrf.mxu2 }
  0xfd   :  { %1185 = vmatpush.msrb.mxu0 %v506_v33  ;;  %1140 = vmatpush.msra.mxu1 %v380_v7  ;;  %v478_v26 = vld [vmem:[#allocation4 + $0xd18] sm:$0xff]  ;;  %v476_v29 = vld [vmem:[#allocation4 + $0xd08] sm:$0xff] }
  0xfe   :  { %1229 = vmatpush.msrb.mxu2 %v562_v34  ;;  %1141 = vmatmul.f32.vlgmr.msra.gmra.mxu1 %v576_v16  ;;  %v456_v16 = vld [vmem:[#allocation4 + $0xc68] sm:$0xff]  ;;  %v510_v30 = vld [vmem:[#allocation4 + $0xe18] sm:$0xff] }
  0xff   :  { %1170 = vmatpush.msrb.mxu3 %v464_v36  ;;  %1186 = vmatpush.msrb.mxu0 %v504_v21  ;;  %v508_v2 = vld [vmem:[#allocation4 + $0xe08] sm:$0xff] }
 0x100   :  { %1205 = vmatpush.msrb.mxu1 %v538_v38  ;;  %1230 = vmatpush.msrb.mxu2 %v560_v40  ;;  %v563_v38 = vld [vmem:[#allocation6] sm:$0x3] }
 0x101   :  { %1171 = vmatpush.msrb.mxu3 %v462_v39  ;;  %1187 = vmatpush.msrb.mxu0 %v502_v42  ;;  %v598_v42 = vperm.slane %v563_v38, 0 }
 0x102   :  { %1206 = vmatpush.msrb.mxu1 %v536_v59  ;;  %1231 = vmatpush.msrb.mxu2 %v558_v44  ;;  %v702_v33 = vpop.f32.mrf.mxu0  ;;  %v599_v44 = vperm.slane %v563_v38, 1 }
 0x103   :  { %1172 = vmatpush.msrb.mxu3 %v460_v24  ;;  %1188 = vmatpush.msrb.mxu0 %v500_v20  ;;  %v722_v7 = vpop.f32.mrf.mxu1  ;;  %v623_v24 = vadd.f32 %v622_v13, %v598_v42 }
 0x104   :  { %1207 = vmatpush.msrb.mxu1 %v534_v45  ;;  %1232 = vmatpush.msrb.mxu2 %v556_v47  ;;  %v742_v36 = vpop.f32.mrf.mxu2 }
 0x105   :  { %1173 = vmatpush.msrb.mxu3 %v458_v46  ;;  %1189 = vmatpush.msrb.mxu0 %v498_v48  ;;  %v643_v20 = vadd.f32 %v642_v31, %v623_v24 }
 0x106   :  { %1208 = vmatpush.msrb.mxu1 %v532_v22  ;;  %1233 = vmatpush.msrb.mxu2 %v554_v49 }
 0x107   :  { %1174 = vmatpush.msrb.mxu3 %v456_v16  ;;  %1190 = vmatpush.msrb.mxu0 %v496_v50  ;;  %v663_v48 = vadd.f32 %v662_v32, %v643_v20 }
 0x108   :  { %1209 = vmatpush.msrb.mxu1 %v530_v51  ;;  %1234 = vmatpush.msrb.mxu2 %v552_v27 }
 0x109   :  { %1175 = vmatpush.msrb.mxu3 %v454_v53  ;;  %1191 = vmatpush.msrb.mxu0 %v494_v54 }
 0x10a   :  { %1210 = vmatpush.msrb.mxu1 %v528_v55  ;;  %1235 = vmatpush.msrb.mxu2 %v550_v57  ;;  %v782_v21 = vpop.f32.mrf.mxu0 }
 0x10b   :  { %1176 = vmatpush.msrb.mxu3 %v452_v56  ;;  %1192 = vmatpush.msrb.mxu0 %v492_v52  ;;  %v802_v39 = vpop.f32.mrf.mxu1 }
 0x10c   :  { %1211 = vmatpush.msrb.mxu1 %v526_v15  ;;  %1236 = vmatpush.msrb.mxu2 %v548_v60  ;;  %v822_v59 = vpop.f32.mrf.mxu2 }
 0x10d   :  { %1177 = vmatpush.msrb.mxu3 %v450_v58  ;;  %1193 = vmatpush.msrb.mxu0 %v490_v61 }
 0x10e   :  { %1212 = vmatpush.msrb.mxu1 %v524_v62  ;;  %1237 = vmatpush.msrb.mxu2 %v546_v0 }
 0x10f   :  { %1178 = vmatpush.msrb.mxu3 %v448_v63  ;;  %1194 = vmatpush.msrb.mxu0 %v488_v3 }
 0x110   :  { %1213 = vmatpush.msrb.mxu1 %v522_v4  ;;  %1238 = vmatpush.msrb.mxu2 %v544_v8 }
 0x111   :  { %1179 = vmatpush.msrb.mxu3 %v446_v6  ;;  %1195 = vmatpush.msrb.mxu0 %v486_v9 }
 0x112   :  { %1214 = vmatpush.msrb.mxu1 %v520_v10  ;;  %1239 = vmatpush.msrb.mxu2 %v542_v12 }
 0x113   :  { %1180 = vmatpush.msrb.mxu3 %v444_v11  ;;  %1196 = vmatpush.msrb.mxu0 %v484_v14 }
 0x114   :  { %1215 = vmatpush.msrb.mxu1 %v518_v17  ;;  %1181 = vmatmul.f32.vlgmr.msrb.gmra.mxu3 %v578_v35  ;;  %v682_v35 = vpop.f32.mrf.mxu3 }
 0x115   :  { %1240 = vmatpush.msrb.mxu2 %v540_v1  ;;  %1197 = vmatpush.msrb.mxu0 %v482_v18  ;;  %v882_v5 = vpop.f32.mrf.mxu1  ;;  %v683_v49 = vadd.f32 %v682_v35, %v663_v48 }
 0x116   :  { %1216 = vmatpush.msrb.mxu1 %v516_v19  ;;  %1265 = vmatmul.msk.f32.vlgmr.msrb.gmra.mxu2 %vm602_vm0, %v581_v41 }
 0x117   :  { %1198 = vmatpush.msrb.mxu0 %v480_v23  ;;  %v703_v53 = vadd.f32 %v702_v33, %v683_v49 }
 0x118   :  { %1217 = vmatpush.msrb.mxu1 %v514_v25  ;;  %v902_v46 = vpop.f32.mrf.mxu2 }
 0x119   :  { %1199 = vmatpush.msrb.mxu0 %v478_v26  ;;  %v723_v55 = vadd.f32 %v722_v7, %v703_v53 }
 0x11a   :  { %1218 = vmatpush.msrb.mxu1 %v512_v28 }
 0x11b   :  { %1200 = vmatpush.msrb.mxu0 %v476_v29  ;;  %v743_v52 = vadd.f32 %v742_v36, %v723_v55 }
 0x11c   :  { %1219 = vmatpush.msrb.mxu1 %v510_v30  ;;  %1201 = vmatmul.f32.vlgmr.msrb.gmra.mxu0 %v579_v43  ;;  %v762_v41 = vpop.f32.mrf.mxu3  ;;  %v862_v43 = vpop.f32.mrf.mxu0 }
 0x11d   :  { %v763_v60 = vadd.f32 %v762_v41, %v743_v52  ;;  %v1253_v41 = vlaneseq }
 0x11e   :  { %1220 = vmatpush.msrb.mxu1 %v508_v2 }
 0x11f   :  { %1221 = vmatmul.f32.vlgmr.msrb.gmra.mxu1 %v580_v37  ;;  %v783_v63 = vadd.f32 %v782_v21, %v763_v60  ;;  %vm1255_vm2 = vcmp.lt.s32.totalorder %v1253_v41, 256 }
 0x121   :  { %v803_v4 = vadd.f32 %v802_v39, %v783_v63 }
 0x123   :  { %v823_v9 = vadd.f32 %v822_v59, %v803_v4 }
 0x124   :  { %v842_v34 = vpop.f32.mrf.mxu3 }
 0x125   :  { %v843_v12 = vadd.f32 %v842_v34, %v823_v9 }
 0x127   :  { %v863_v17 = vadd.f32 %v862_v43, %v843_v12 }
 0x129   :  { %v883_v23 = vadd.f32 %v882_v5, %v863_v17 }
 0x12b   :  { %v903_v28 = vadd.f32 %v902_v46, %v883_v23 }
 0x12c   :  { %v922_v40 = vpop.f32.mrf.mxu3 }
 0x12d   :  { %v923_v13 = vadd.f32 %v922_v40, %v903_v28 }
 0x12f   :  { %v1245_v33 = vmax.f32 %v923_v13, 0.0 }
 0x152   :  { %v942_v37 = vpop.f32.mrf.mxu3 }
 0x153   :  { %v943_v45 = vadd.f32 %v942_v37, %v599_v44 }
 0x155   :  { %v962_v47 = vpop.f32.mrf.mxu0 }
 0x156   :  { %v963_v22 = vadd.f32 %v962_v47, %v943_v45 }
 0x158   :  { %v982_v16 = vpop.f32.mrf.mxu1 }
 0x159   :  { %v983_v50 = vadd.f32 %v982_v16, %v963_v22  ;;  %v1002_v51 = vpop.f32.mrf.mxu2 }
 0x15b   :  { %v1003_v27 = vadd.f32 %v1002_v51, %v983_v50  ;;  %v1022_v54 = vpop.f32.mrf.mxu3 }
 0x15d   :  { %v1023_v56 = vadd.f32 %v1022_v54, %v1003_v27 }
 0x15f   :  { %v1042_v57 = vpop.f32.mrf.mxu0 }
 0x160   :  { %v1043_v15 = vadd.f32 %v1042_v57, %v1023_v56 }
 0x161   :  { %v1062_v58 = vpop.f32.mrf.mxu1 }
 0x162   :  { %v1063_v61 = vadd.f32 %v1062_v58, %v1043_v15 }
 0x163   :  { %v1082_v62 = vpop.f32.mrf.mxu2 }
 0x164   :  { %v1083_v3 = vadd.f32 %v1082_v62, %v1063_v61 }
 0x176   :  { %v1102_v0 = vpop.f32.mrf.mxu3 }
 0x177   :  { %v1103_v6 = vadd.f32 %v1102_v0, %v1083_v3 }
 0x178   :  { %v1122_v8 = vpop.f32.mrf.mxu0 }
 0x179   :  { %v1123_v10 = vadd.f32 %v1122_v8, %v1103_v6 }
 0x17b   :  { %v1142_v11 = vpop.f32.mrf.mxu1 }
 0x17c   :  { %v1143_v1 = vadd.f32 %v1142_v11, %v1123_v10 }
 0x17f   :  { %v1162_v14 = vpop.f32.mrf.mxu2 }
 0x180   :  { %v1163_v18 = vadd.f32 %v1162_v14, %v1143_v1 }
 0x197   :  { %v1182_v19 = vpop.f32.mrf.mxu3 }
 0x198   :  { %v1183_v25 = vadd.f32 %v1182_v19, %v1163_v18 }
 0x199   :  { %v1202_v26 = vpop.f32.mrf.mxu0  ;;  %v1242_v2 = vpop.f32.mrf.mxu2 }
 0x19a   :  { %v1203_v29 = vadd.f32 %v1202_v26, %v1183_v25 }
 0x19c   :  { %v1222_v30 = vpop.f32.mrf.mxu1 }
 0x19d   :  { %v1223_v35 = vadd.f32 %v1222_v30, %v1203_v29 }
 0x19f   :  { %v1243_v31 = vadd.f32 %v1242_v2, %v1223_v35 }
 0x1a1   :  { %v1246_v32 = vmax.f32 %v1243_v31, 0.0 }
 0x1a3   :  { %v1249_v7 = vrot.slane %v1246_v32, 7 }
 0x1a5   :  { %v1251_v34 = vsel %vm1250_vm1, %v1245_v33, %v1249_v7 }
 0x1a6   :  { %1257 = vst.msk [vmem:[%s1473_s3] sm:$0x3] %vm1255_vm2, %v1251_v34 }
 0x1a7   :  { %1262 = vsyncpa [#allocation3], 1 }
 0x1a8   :  { %1263 = vsyncpa [#allocation5], 1 }

</bundles_post_ra>
